<compile_context>
chip_gen: v5e
topology: v5e:2x2
jax: 0.10.0
libtpu: 0.0.40
codegen_flags: <defaults>
</compile_context>

<pallas_src>
import functools
import math

import jax
import jax.numpy as jnp
from jax.experimental import pallas as pl
from jax.experimental.pallas import tpu as pltpu


def _round_up(v, m):
    return ((v + m - 1) // m) * m


# ---------------------------------------------------------------------------
# Fused forward kernel: conv1+relu -> conv2+relu -> conv3+relu -> fc
# ---------------------------------------------------------------------------
def _fused_forward_kernel(cols1_ref, w1_ref, b1_ref, w2_ref, b2_ref,
                          w3_ref, b3_ref, w4_ref, b4_ref, out_ref, *, tb):
    """One batch tile of `tb` images.

    cols1_ref : [81*tb, 75]  bf16, rows ordered (kh2, kw2, oh2, ow2, b),
                             cols ordered (c_in, kh1, kw1)
    w1_ref    : [75, 32]     bf16    b1_ref: [1, 32]   f32
    w2_ref    : [288, 64]    bf16, rows (kh2, kw2, c1)   b2_ref: [1, 64]
    w3_ref    : [576, 256]   bf16, rows (kh3, kw3, c2)   b3_ref: [1, 256]
    w4_ref    : [256, 4]     bf16                         b4_ref: [1, 4]
    out_ref   : [tb, 4]      f32
    """
    bf16 = jnp.bfloat16
    m2 = 9 * tb

    # conv1 (5x5 / stride 5): one MXU matmul over all 81 patches of the tile.
    a1 = jnp.dot(cols1_ref[...], w1_ref[...],
                 preferred_element_type=jnp.float32)
    a1 = jnp.maximum(a1 + b1_ref[...], 0.0)                   # [81*tb, 32] f32

    # conv2 (3x3 / stride 3): sum over the 9 kernel positions.  Group g of a1
    # (a sublane-aligned row slice) holds the conv1 outputs at kernel offset g
    # for every (oh2, ow2, b) -- no transpose or lane-concat needed.
    acc2 = jnp.zeros((m2, 64), jnp.float32)
    for g in range(9):
        lhs = a1[g * m2:(g + 1) * m2, :].astype(bf16)
        acc2 = acc2 + jnp.dot(lhs, w2_ref[g * 32:(g + 1) * 32, :],
                              preferred_element_type=jnp.float32)
    a2 = jnp.maximum(acc2 + b2_ref[...], 0.0)                 # [9*tb, 64] f32

    # conv3 (3x3 / stride 3 on the 3x3 map): sum over the 9 spatial positions.
    acc3 = jnp.zeros((tb, 256), jnp.float32)
    for p in range(9):
        lhs = a2[p * tb:(p + 1) * tb, :].astype(bf16)
        acc3 = acc3 + jnp.dot(lhs, w3_ref[p * 64:(p + 1) * 64, :],
                              preferred_element_type=jnp.float32)
    a3 = jnp.maximum(acc3 + b3_ref[...], 0.0)                 # [tb, 256] f32

    # fc merged into the same kernel (no extra launch / HBM round trip).
    logits = jnp.dot(a3.astype(bf16), w4_ref[...],
                     preferred_element_type=jnp.float32) + b4_ref[...]
    out_ref[...] = logits.astype(out_ref.dtype)


# ---------------------------------------------------------------------------
# Host-side glue
# ---------------------------------------------------------------------------
def _build_conv1_cols(x, tb):
    """im2col for conv1, ordered so later layers need only row slices.

    Returns cols [T*81*tb, 75] bf16 where T = ceil(B / tb).  Within a tile,
    rows are ordered (kh2, kw2, oh2, ow2, b_local); columns are (c, kh1, kw1).
    """
    b = x.shape[0]
    bp = _round_up(b, tb)
    if bp != b:
        x = jnp.pad(x, ((0, bp - b), (0, 0), (0, 0), (0, 0)))
    t = bp // tb
    # 45 = oh2(3) * kh2(3) * kh1(5) along each spatial axis.
    x = x.reshape(t, tb, 3, 3, 3, 5, 3, 3, 5)
    #            t  b   c  oh2 kh2 kh1 ow2 kw2 kw1
    x = x.transpose(0, 4, 7, 3, 6, 1, 2, 5, 8)
    #            t  kh2 kw2 oh2 ow2 b  c  kh1 kw1
    cols = x.reshape(t * 81 * tb, 75).astype(jnp.bfloat16)
    return cols, bp, t


def prepare_weights(params):
    """One-time repack of PyTorch-layout weights into matmul form (bf16)."""
    bf16, f32 = jnp.bfloat16, jnp.float32
    return {
        "w1": params["conv1_w"].reshape(32, 75).T.astype(bf16),              # (c,kh1,kw1) rows
        "b1": params["conv1_b"].reshape(1, 32).astype(f32),
        "w2": params["conv2_w"].transpose(2, 3, 1, 0).reshape(288, 64).astype(bf16),   # (kh2,kw2,c1)
        "b2": params["conv2_b"].reshape(1, 64).astype(f32),
        "w3": params["conv3_w"].transpose(2, 3, 1, 0).reshape(576, 256).astype(bf16),  # (kh3,kw3,c2)
        "b3": params["conv3_b"].reshape(1, 256).astype(f32),
        "w4": params["fc_w"].T.astype(bf16),                                  # [256, 4]
        "b4": params["fc_b"].reshape(1, 4).astype(f32),
    }


def resistor_classifier_forward(prep, x, block_b=128):
    """x: [B, 3, 45, 45] -> logits [B, 4]."""
    b = x.shape[0]
    # Batch tile size: multiple of 8, capped so the per-tile VMEM footprint
    # stays small on every TPU generation (v5e 16 MiB default scoped ...
    # v7x 64 MiB physical).
    tb = max(8, min(_round_up(block_b, 8), _round_up(b, 8)))
    cols, bp, t = _build_conv1_cols(x, tb)
    m1 = 81 * tb

    kernel = functools.partial(_fused_forward_kernel, tb=tb)
    out = pl.pallas_call(
        kernel,
        out_shape=jax.ShapeDtypeStruct((bp, 4), jnp.float32),
        grid=(t,),
        in_specs=[
            pl.BlockSpec((m1, 75), lambda i: (i, 0)),     # conv1 patches, per batch tile
            pl.BlockSpec((75, 32), lambda i: (0, 0)),     # weights: fetched once
            pl.BlockSpec((1, 32), lambda i: (0, 0)),
            pl.BlockSpec((288, 64), lambda i: (0, 0)),
            pl.BlockSpec((1, 64), lambda i: (0, 0)),
            pl.BlockSpec((576, 256), lambda i: (0, 0)),
            pl.BlockSpec((1, 256), lambda i: (0, 0)),
            pl.BlockSpec((256, 4), lambda i: (0, 0)),
            pl.BlockSpec((1, 4), lambda i: (0, 0)),
        ],
        out_specs=pl.BlockSpec((tb, 4), lambda i: (i, 0)),
        compiler_params=pltpu.CompilerParams(
            dimension_semantics=("parallel",),
            vmem_limit_bytes=32 * 1024 * 1024),
    )(cols, prep["w1"], prep["b1"], prep["w2"], prep["b2"],
      prep["w3"], prep["b3"], prep["w4"], prep["b4"])
    return out[:b]


# ---------------------------------------------------------------------------
# Parameter init (xavier_uniform like torch, deterministic)
# ---------------------------------------------------------------------------
def _xavier_uniform(key, shape, fan_in, fan_out):
    bound = math.sqrt(6.0 / (fan_in + fan_out))
    return jax.random.uniform(key, shape, jnp.float32, -bound, bound)


def init_params(key):
    k1, k2, k3, k4 = jax.random.split(key, 4)
    return {
        "conv1_w": _xavier_uniform(k1, (32, 3, 5, 5), 3 * 5 * 5, 32 * 5 * 5),
        "conv1_b": jnp.zeros((32,), jnp.float32),
        "conv2_w": _xavier_uniform(k2, (64, 32, 3, 3), 32 * 3 * 3, 64 * 3 * 3),
        "conv2_b": jnp.zeros((64,), jnp.float32),
        "conv3_w": _xavier_uniform(k3, (256, 64, 3, 3), 64 * 3 * 3, 256 * 3 * 3),
        "conv3_b": jnp.zeros((256,), jnp.float32),
        "fc_w": _xavier_uniform(k4, (4, 256), 256, 4),   # torch Linear: [out, in]
        "fc_b": jnp.zeros((4,), jnp.float32),
    }


# ---------------------------------------------------------------------------
# Pure-JAX f32 reference (ground truth for the correctness check)
# ---------------------------------------------------------------------------
def _reference_forward(params, x):
    def conv(x, w, b, s):
        y = jax.lax.conv_general_dilated(
            x, w, window_strides=(s, s), padding="VALID",
            dimension_numbers=("NCHW", "OIHW", "NCHW"),
            precision=jax.lax.Precision.HIGHEST)
        return y + b[None, :, None, None]

    x = jnp.maximum(conv(x, params["conv1_w"], params["conv1_b"], 5), 0.0)
    x = jnp.maximum(conv(x, params["conv2_w"], params["conv2_b"], 3), 0.0)
    x = jnp.maximum(conv(x, params["conv3_w"], params["conv3_b"], 3), 0.0)
    x = x.reshape(x.shape[0], -1)
    return x @ params["fc_w"].T + params["fc_b"]


if __name__ == "__main__":
    key = jax.random.PRNGKey(0)
    pkey, xkey = jax.random.split(key)
    params = init_params(pkey)
    prepared = prepare_weights(params)

    forward = jax.jit(resistor_classifier_forward, static_argnames=("block_b",))

    # Case 1: small batch (batch padded to a multiple of 8, single grid tile).
    # Spatial size must be 45 (=5*3*3) so flatten yields 256 features.
    x1 = jax.random.normal(xkey, (2, 3, 45, 45), jnp.float32)
    out1 = jax.block_until_ready(forward(prepared, x1))
    ref1 = jax.block_until_ready(_reference_forward(params, x1))
    assert out1.shape == (2, 4), out1.shape
    assert jnp.allclose(out1, ref1, rtol=2e-2, atol=2e-2), \
        float(jnp.max(jnp.abs(out1 - ref1)))

    # Case 2: multiple batch tiles (grid=(2,)), exercises the parallel axis.
    x2 = jax.random.normal(jax.random.fold_in(xkey, 1), (16, 3, 45, 45),
                           jnp.float32)
    out2 = jax.block_until_ready(forward(prepared, x2, block_b=8))
    ref2 = jax.block_until_ready(_reference_forward(params, x2))
    assert out2.shape == (16, 4), out2.shape
    assert jnp.allclose(out2, ref2, rtol=2e-2, atol=2e-2), \
        float(jnp.max(jnp.abs(out2 - ref2)))

    print("KERNEL_OK")
</pallas_src>

<mosaic_0001>
module attributes {stable_mosaic.version = 11 : i64} {
  func.func @_fused_forward_kernel(%arg0: i32, %arg1: memref<648x75xbf16, #tpu.memory_space<vmem>>, %arg2: memref<75x32xbf16, #tpu.memory_space<vmem>>, %arg3: memref<1x32xf32, #tpu.memory_space<vmem>>, %arg4: memref<288x64xbf16, #tpu.memory_space<vmem>>, %arg5: memref<1x64xf32, #tpu.memory_space<vmem>>, %arg6: memref<576x256xbf16, #tpu.memory_space<vmem>>, %arg7: memref<1x256xf32, #tpu.memory_space<vmem>>, %arg8: memref<256x4xbf16, #tpu.memory_space<vmem>>, %arg9: memref<1x4xf32, #tpu.memory_space<vmem>>, %arg10: memref<8x4xf32, #tpu.memory_space<vmem>>) attributes {dimension_semantics = [#tpu.dimension_semantics<parallel>], iteration_bounds = array<i64: 1>, scalar_prefetch = 0 : i64, scratch_operands = 0 : i64, tpu.core_type = #tpu.core_type<tc>, window_params = [{transform_indices = @transform_0, window_bounds = array<i64: 648, 75>}, {pipeline_mode = #tpu.pipeline_mode<synchronous>, transform_indices = @transform_1, window_bounds = array<i64: 75, 32>}, {pipeline_mode = #tpu.pipeline_mode<synchronous>, transform_indices = @transform_2, window_bounds = array<i64: 1, 32>}, {pipeline_mode = #tpu.pipeline_mode<synchronous>, transform_indices = @transform_3, window_bounds = array<i64: 288, 64>}, {pipeline_mode = #tpu.pipeline_mode<synchronous>, transform_indices = @transform_4, window_bounds = array<i64: 1, 64>}, {pipeline_mode = #tpu.pipeline_mode<synchronous>, transform_indices = @transform_5, window_bounds = array<i64: 576, 256>}, {pipeline_mode = #tpu.pipeline_mode<synchronous>, transform_indices = @transform_6, window_bounds = array<i64: 1, 256>}, {pipeline_mode = #tpu.pipeline_mode<synchronous>, transform_indices = @transform_7, window_bounds = array<i64: 256, 4>}, {pipeline_mode = #tpu.pipeline_mode<synchronous>, transform_indices = @transform_8, window_bounds = array<i64: 1, 4>}, {transform_indices = @transform_9, window_bounds = array<i64: 8, 4>}]} {
    %c0 = arith.constant 0 : index
    %c0_0 = arith.constant 0 : index
    %0 = vector.load %arg1[%c0, %c0_0] : memref<648x75xbf16, #tpu.memory_space<vmem>>, vector<648x75xbf16>
    %c0_1 = arith.constant 0 : index
    %c0_2 = arith.constant 0 : index
    %1 = vector.load %arg2[%c0_1, %c0_2] : memref<75x32xbf16, #tpu.memory_space<vmem>>, vector<75x32xbf16>
    %cst = arith.constant dense<0.000000e+00> : vector<648x32xf32>
    %2 = tpu.matmul %0, %1, %cst {dimension_numbers = #tpu.dot_dimension_numbers<[1], [0], [0], [1], [0, 0, 1, 1], [], []>} : vector<648x75xbf16>, vector<75x32xbf16>, vector<648x32xf32> -> vector<648x32xf32>
    %c0_3 = arith.constant 0 : index
    %c0_4 = arith.constant 0 : index
    %3 = vector.load %arg3[%c0_3, %c0_4] : memref<1x32xf32, #tpu.memory_space<vmem>>, vector<1x32xf32>
    %4 = vector.broadcast %3 : vector<1x32xf32> to vector<648x32xf32>
    %5 = arith.addf %2, %4 : vector<648x32xf32>
    %cst_5 = arith.constant 0.000000e+00 : f32
    %6 = vector.broadcast %cst_5 : f32 to vector<648x32xf32>
    %7 = arith.maximumf %5, %6 : vector<648x32xf32>
    %cst_6 = arith.constant 0.000000e+00 : f32
    %8 = vector.broadcast %cst_6 : f32 to vector<72x64xf32>
    %9 = vector.extract_strided_slice %7 {offsets = [0, 0], sizes = [72, 32], strides = [1, 1]} : vector<648x32xf32> to vector<72x32xf32>
    %10 = arith.truncf %9 : vector<72x32xf32> to vector<72x32xbf16>
    %c0_7 = arith.constant 0 : index
    %c0_8 = arith.constant 0 : index
    %11 = vector.load %arg4[%c0_7, %c0_8] : memref<288x64xbf16, #tpu.memory_space<vmem>>, vector<32x64xbf16>
    %cst_9 = arith.constant dense<0.000000e+00> : vector<72x64xf32>
    %12 = tpu.matmul %10, %11, %cst_9 {dimension_numbers = #tpu.dot_dimension_numbers<[1], [0], [0], [1], [0, 0, 1, 1], [], []>} : vector<72x32xbf16>, vector<32x64xbf16>, vector<72x64xf32> -> vector<72x64xf32>
    %13 = arith.addf %8, %12 : vector<72x64xf32>
    %14 = vector.extract_strided_slice %7 {offsets = [72, 0], sizes = [72, 32], strides = [1, 1]} : vector<648x32xf32> to vector<72x32xf32>
    %15 = arith.truncf %14 : vector<72x32xf32> to vector<72x32xbf16>
    %c32 = arith.constant 32 : index
    %c0_10 = arith.constant 0 : index
    %16 = vector.load %arg4[%c32, %c0_10] : memref<288x64xbf16, #tpu.memory_space<vmem>>, vector<32x64xbf16>
    %cst_11 = arith.constant dense<0.000000e+00> : vector<72x64xf32>
    %17 = tpu.matmul %15, %16, %cst_11 {dimension_numbers = #tpu.dot_dimension_numbers<[1], [0], [0], [1], [0, 0, 1, 1], [], []>} : vector<72x32xbf16>, vector<32x64xbf16>, vector<72x64xf32> -> vector<72x64xf32>
    %18 = arith.addf %13, %17 : vector<72x64xf32>
    %19 = vector.extract_strided_slice %7 {offsets = [144, 0], sizes = [72, 32], strides = [1, 1]} : vector<648x32xf32> to vector<72x32xf32>
    %20 = arith.truncf %19 : vector<72x32xf32> to vector<72x32xbf16>
    %c64 = arith.constant 64 : index
    %c0_12 = arith.constant 0 : index
    %21 = vector.load %arg4[%c64, %c0_12] : memref<288x64xbf16, #tpu.memory_space<vmem>>, vector<32x64xbf16>
    %cst_13 = arith.constant dense<0.000000e+00> : vector<72x64xf32>
    %22 = tpu.matmul %20, %21, %cst_13 {dimension_numbers = #tpu.dot_dimension_numbers<[1], [0], [0], [1], [0, 0, 1, 1], [], []>} : vector<72x32xbf16>, vector<32x64xbf16>, vector<72x64xf32> -> vector<72x64xf32>
    %23 = arith.addf %18, %22 : vector<72x64xf32>
    %24 = vector.extract_strided_slice %7 {offsets = [216, 0], sizes = [72, 32], strides = [1, 1]} : vector<648x32xf32> to vector<72x32xf32>
    %25 = arith.truncf %24 : vector<72x32xf32> to vector<72x32xbf16>
    %c96 = arith.constant 96 : index
    %c0_14 = arith.constant 0 : index
    %26 = vector.load %arg4[%c96, %c0_14] : memref<288x64xbf16, #tpu.memory_space<vmem>>, vector<32x64xbf16>
    %cst_15 = arith.constant dense<0.000000e+00> : vector<72x64xf32>
    %27 = tpu.matmul %25, %26, %cst_15 {dimension_numbers = #tpu.dot_dimension_numbers<[1], [0], [0], [1], [0, 0, 1, 1], [], []>} : vector<72x32xbf16>, vector<32x64xbf16>, vector<72x64xf32> -> vector<72x64xf32>
    %28 = arith.addf %23, %27 : vector<72x64xf32>
    %29 = vector.extract_strided_slice %7 {offsets = [288, 0], sizes = [72, 32], strides = [1, 1]} : vector<648x32xf32> to vector<72x32xf32>
    %30 = arith.truncf %29 : vector<72x32xf32> to vector<72x32xbf16>
    %c128 = arith.constant 128 : index
    %c0_16 = arith.constant 0 : index
    %31 = vector.load %arg4[%c128, %c0_16] : memref<288x64xbf16, #tpu.memory_space<vmem>>, vector<32x64xbf16>
    %cst_17 = arith.constant dense<0.000000e+00> : vector<72x64xf32>
    %32 = tpu.matmul %30, %31, %cst_17 {dimension_numbers = #tpu.dot_dimension_numbers<[1], [0], [0], [1], [0, 0, 1, 1], [], []>} : vector<72x32xbf16>, vector<32x64xbf16>, vector<72x64xf32> -> vector<72x64xf32>
    %33 = arith.addf %28, %32 : vector<72x64xf32>
    %34 = vector.extract_strided_slice %7 {offsets = [360, 0], sizes = [72, 32], strides = [1, 1]} : vector<648x32xf32> to vector<72x32xf32>
    %35 = arith.truncf %34 : vector<72x32xf32> to vector<72x32xbf16>
    %c160 = arith.constant 160 : index
    %c0_18 = arith.constant 0 : index
    %36 = vector.load %arg4[%c160, %c0_18] : memref<288x64xbf16, #tpu.memory_space<vmem>>, vector<32x64xbf16>
    %cst_19 = arith.constant dense<0.000000e+00> : vector<72x64xf32>
    %37 = tpu.matmul %35, %36, %cst_19 {dimension_numbers = #tpu.dot_dimension_numbers<[1], [0], [0], [1], [0, 0, 1, 1], [], []>} : vector<72x32xbf16>, vector<32x64xbf16>, vector<72x64xf32> -> vector<72x64xf32>
    %38 = arith.addf %33, %37 : vector<72x64xf32>
    %39 = vector.extract_strided_slice %7 {offsets = [432, 0], sizes = [72, 32], strides = [1, 1]} : vector<648x32xf32> to vector<72x32xf32>
    %40 = arith.truncf %39 : vector<72x32xf32> to vector<72x32xbf16>
    %c192 = arith.constant 192 : index
    %c0_20 = arith.constant 0 : index
    %41 = vector.load %arg4[%c192, %c0_20] : memref<288x64xbf16, #tpu.memory_space<vmem>>, vector<32x64xbf16>
    %cst_21 = arith.constant dense<0.000000e+00> : vector<72x64xf32>
    %42 = tpu.matmul %40, %41, %cst_21 {dimension_numbers = #tpu.dot_dimension_numbers<[1], [0], [0], [1], [0, 0, 1, 1], [], []>} : vector<72x32xbf16>, vector<32x64xbf16>, vector<72x64xf32> -> vector<72x64xf32>
    %43 = arith.addf %38, %42 : vector<72x64xf32>
    %44 = vector.extract_strided_slice %7 {offsets = [504, 0], sizes = [72, 32], strides = [1, 1]} : vector<648x32xf32> to vector<72x32xf32>
    %45 = arith.truncf %44 : vector<72x32xf32> to vector<72x32xbf16>
    %c224 = arith.constant 224 : index
    %c0_22 = arith.constant 0 : index
    %46 = vector.load %arg4[%c224, %c0_22] : memref<288x64xbf16, #tpu.memory_space<vmem>>, vector<32x64xbf16>
    %cst_23 = arith.constant dense<0.000000e+00> : vector<72x64xf32>
    %47 = tpu.matmul %45, %46, %cst_23 {dimension_numbers = #tpu.dot_dimension_numbers<[1], [0], [0], [1], [0, 0, 1, 1], [], []>} : vector<72x32xbf16>, vector<32x64xbf16>, vector<72x64xf32> -> vector<72x64xf32>
    %48 = arith.addf %43, %47 : vector<72x64xf32>
    %49 = vector.extract_strided_slice %7 {offsets = [576, 0], sizes = [72, 32], strides = [1, 1]} : vector<648x32xf32> to vector<72x32xf32>
    %50 = arith.truncf %49 : vector<72x32xf32> to vector<72x32xbf16>
    %c256 = arith.constant 256 : index
    %c0_24 = arith.constant 0 : index
    %51 = vector.load %arg4[%c256, %c0_24] : memref<288x64xbf16, #tpu.memory_space<vmem>>, vector<32x64xbf16>
    %cst_25 = arith.constant dense<0.000000e+00> : vector<72x64xf32>
    %52 = tpu.matmul %50, %51, %cst_25 {dimension_numbers = #tpu.dot_dimension_numbers<[1], [0], [0], [1], [0, 0, 1, 1], [], []>} : vector<72x32xbf16>, vector<32x64xbf16>, vector<72x64xf32> -> vector<72x64xf32>
    %53 = arith.addf %48, %52 : vector<72x64xf32>
    %c0_26 = arith.constant 0 : index
    %c0_27 = arith.constant 0 : index
    %54 = vector.load %arg5[%c0_26, %c0_27] : memref<1x64xf32, #tpu.memory_space<vmem>>, vector<1x64xf32>
    %55 = vector.broadcast %54 : vector<1x64xf32> to vector<72x64xf32>
    %56 = arith.addf %53, %55 : vector<72x64xf32>
    %cst_28 = arith.constant 0.000000e+00 : f32
    %57 = vector.broadcast %cst_28 : f32 to vector<72x64xf32>
    %58 = arith.maximumf %56, %57 : vector<72x64xf32>
    %cst_29 = arith.constant 0.000000e+00 : f32
    %59 = vector.broadcast %cst_29 : f32 to vector<8x256xf32>
    %60 = vector.extract_strided_slice %58 {offsets = [0, 0], sizes = [8, 64], strides = [1, 1]} : vector<72x64xf32> to vector<8x64xf32>
    %61 = arith.truncf %60 : vector<8x64xf32> to vector<8x64xbf16>
    %c0_30 = arith.constant 0 : index
    %c0_31 = arith.constant 0 : index
    %62 = vector.load %arg6[%c0_30, %c0_31] : memref<576x256xbf16, #tpu.memory_space<vmem>>, vector<64x256xbf16>
    %cst_32 = arith.constant dense<0.000000e+00> : vector<8x256xf32>
    %63 = tpu.matmul %61, %62, %cst_32 {dimension_numbers = #tpu.dot_dimension_numbers<[1], [0], [0], [1], [0, 0, 1, 1], [], []>} : vector<8x64xbf16>, vector<64x256xbf16>, vector<8x256xf32> -> vector<8x256xf32>
    %64 = arith.addf %59, %63 : vector<8x256xf32>
    %65 = vector.extract_strided_slice %58 {offsets = [8, 0], sizes = [8, 64], strides = [1, 1]} : vector<72x64xf32> to vector<8x64xf32>
    %66 = arith.truncf %65 : vector<8x64xf32> to vector<8x64xbf16>
    %c64_33 = arith.constant 64 : index
    %c0_34 = arith.constant 0 : index
    %67 = vector.load %arg6[%c64_33, %c0_34] : memref<576x256xbf16, #tpu.memory_space<vmem>>, vector<64x256xbf16>
    %cst_35 = arith.constant dense<0.000000e+00> : vector<8x256xf32>
    %68 = tpu.matmul %66, %67, %cst_35 {dimension_numbers = #tpu.dot_dimension_numbers<[1], [0], [0], [1], [0, 0, 1, 1], [], []>} : vector<8x64xbf16>, vector<64x256xbf16>, vector<8x256xf32> -> vector<8x256xf32>
    %69 = arith.addf %64, %68 : vector<8x256xf32>
    %70 = vector.extract_strided_slice %58 {offsets = [16, 0], sizes = [8, 64], strides = [1, 1]} : vector<72x64xf32> to vector<8x64xf32>
    %71 = arith.truncf %70 : vector<8x64xf32> to vector<8x64xbf16>
    %c128_36 = arith.constant 128 : index
    %c0_37 = arith.constant 0 : index
    %72 = vector.load %arg6[%c128_36, %c0_37] : memref<576x256xbf16, #tpu.memory_space<vmem>>, vector<64x256xbf16>
    %cst_38 = arith.constant dense<0.000000e+00> : vector<8x256xf32>
    %73 = tpu.matmul %71, %72, %cst_38 {dimension_numbers = #tpu.dot_dimension_numbers<[1], [0], [0], [1], [0, 0, 1, 1], [], []>} : vector<8x64xbf16>, vector<64x256xbf16>, vector<8x256xf32> -> vector<8x256xf32>
    %74 = arith.addf %69, %73 : vector<8x256xf32>
    %75 = vector.extract_strided_slice %58 {offsets = [24, 0], sizes = [8, 64], strides = [1, 1]} : vector<72x64xf32> to vector<8x64xf32>
    %76 = arith.truncf %75 : vector<8x64xf32> to vector<8x64xbf16>
    %c192_39 = arith.constant 192 : index
    %c0_40 = arith.constant 0 : index
    %77 = vector.load %arg6[%c192_39, %c0_40] : memref<576x256xbf16, #tpu.memory_space<vmem>>, vector<64x256xbf16>
    %cst_41 = arith.constant dense<0.000000e+00> : vector<8x256xf32>
    %78 = tpu.matmul %76, %77, %cst_41 {dimension_numbers = #tpu.dot_dimension_numbers<[1], [0], [0], [1], [0, 0, 1, 1], [], []>} : vector<8x64xbf16>, vector<64x256xbf16>, vector<8x256xf32> -> vector<8x256xf32>
    %79 = arith.addf %74, %78 : vector<8x256xf32>
    %80 = vector.extract_strided_slice %58 {offsets = [32, 0], sizes = [8, 64], strides = [1, 1]} : vector<72x64xf32> to vector<8x64xf32>
    %81 = arith.truncf %80 : vector<8x64xf32> to vector<8x64xbf16>
    %c256_42 = arith.constant 256 : index
    %c0_43 = arith.constant 0 : index
    %82 = vector.load %arg6[%c256_42, %c0_43] : memref<576x256xbf16, #tpu.memory_space<vmem>>, vector<64x256xbf16>
    %cst_44 = arith.constant dense<0.000000e+00> : vector<8x256xf32>
    %83 = tpu.matmul %81, %82, %cst_44 {dimension_numbers = #tpu.dot_dimension_numbers<[1], [0], [0], [1], [0, 0, 1, 1], [], []>} : vector<8x64xbf16>, vector<64x256xbf16>, vector<8x256xf32> -> vector<8x256xf32>
    %84 = arith.addf %79, %83 : vector<8x256xf32>
    %85 = vector.extract_strided_slice %58 {offsets = [40, 0], sizes = [8, 64], strides = [1, 1]} : vector<72x64xf32> to vector<8x64xf32>
    %86 = arith.truncf %85 : vector<8x64xf32> to vector<8x64xbf16>
    %c320 = arith.constant 320 : index
    %c0_45 = arith.constant 0 : index
    %87 = vector.load %arg6[%c320, %c0_45] : memref<576x256xbf16, #tpu.memory_space<vmem>>, vector<64x256xbf16>
    %cst_46 = arith.constant dense<0.000000e+00> : vector<8x256xf32>
    %88 = tpu.matmul %86, %87, %cst_46 {dimension_numbers = #tpu.dot_dimension_numbers<[1], [0], [0], [1], [0, 0, 1, 1], [], []>} : vector<8x64xbf16>, vector<64x256xbf16>, vector<8x256xf32> -> vector<8x256xf32>
    %89 = arith.addf %84, %88 : vector<8x256xf32>
    %90 = vector.extract_strided_slice %58 {offsets = [48, 0], sizes = [8, 64], strides = [1, 1]} : vector<72x64xf32> to vector<8x64xf32>
    %91 = arith.truncf %90 : vector<8x64xf32> to vector<8x64xbf16>
    %c384 = arith.constant 384 : index
    %c0_47 = arith.constant 0 : index
    %92 = vector.load %arg6[%c384, %c0_47] : memref<576x256xbf16, #tpu.memory_space<vmem>>, vector<64x256xbf16>
    %cst_48 = arith.constant dense<0.000000e+00> : vector<8x256xf32>
    %93 = tpu.matmul %91, %92, %cst_48 {dimension_numbers = #tpu.dot_dimension_numbers<[1], [0], [0], [1], [0, 0, 1, 1], [], []>} : vector<8x64xbf16>, vector<64x256xbf16>, vector<8x256xf32> -> vector<8x256xf32>
    %94 = arith.addf %89, %93 : vector<8x256xf32>
    %95 = vector.extract_strided_slice %58 {offsets = [56, 0], sizes = [8, 64], strides = [1, 1]} : vector<72x64xf32> to vector<8x64xf32>
    %96 = arith.truncf %95 : vector<8x64xf32> to vector<8x64xbf16>
    %c448 = arith.constant 448 : index
    %c0_49 = arith.constant 0 : index
    %97 = vector.load %arg6[%c448, %c0_49] : memref<576x256xbf16, #tpu.memory_space<vmem>>, vector<64x256xbf16>
    %cst_50 = arith.constant dense<0.000000e+00> : vector<8x256xf32>
    %98 = tpu.matmul %96, %97, %cst_50 {dimension_numbers = #tpu.dot_dimension_numbers<[1], [0], [0], [1], [0, 0, 1, 1], [], []>} : vector<8x64xbf16>, vector<64x256xbf16>, vector<8x256xf32> -> vector<8x256xf32>
    %99 = arith.addf %94, %98 : vector<8x256xf32>
    %100 = vector.extract_strided_slice %58 {offsets = [64, 0], sizes = [8, 64], strides = [1, 1]} : vector<72x64xf32> to vector<8x64xf32>
    %101 = arith.truncf %100 : vector<8x64xf32> to vector<8x64xbf16>
    %c512 = arith.constant 512 : index
    %c0_51 = arith.constant 0 : index
    %102 = vector.load %arg6[%c512, %c0_51] : memref<576x256xbf16, #tpu.memory_space<vmem>>, vector<64x256xbf16>
    %cst_52 = arith.constant dense<0.000000e+00> : vector<8x256xf32>
    %103 = tpu.matmul %101, %102, %cst_52 {dimension_numbers = #tpu.dot_dimension_numbers<[1], [0], [0], [1], [0, 0, 1, 1], [], []>} : vector<8x64xbf16>, vector<64x256xbf16>, vector<8x256xf32> -> vector<8x256xf32>
    %104 = arith.addf %99, %103 : vector<8x256xf32>
    %c0_53 = arith.constant 0 : index
    %c0_54 = arith.constant 0 : index
    %105 = vector.load %arg7[%c0_53, %c0_54] : memref<1x256xf32, #tpu.memory_space<vmem>>, vector<1x256xf32>
    %106 = vector.broadcast %105 : vector<1x256xf32> to vector<8x256xf32>
    %107 = arith.addf %104, %106 : vector<8x256xf32>
    %cst_55 = arith.constant 0.000000e+00 : f32
    %108 = vector.broadcast %cst_55 : f32 to vector<8x256xf32>
    %109 = arith.maximumf %107, %108 : vector<8x256xf32>
    %110 = arith.truncf %109 : vector<8x256xf32> to vector<8x256xbf16>
    %c0_56 = arith.constant 0 : index
    %c0_57 = arith.constant 0 : index
    %111 = vector.load %arg8[%c0_56, %c0_57] : memref<256x4xbf16, #tpu.memory_space<vmem>>, vector<256x4xbf16>
    %cst_58 = arith.constant dense<0.000000e+00> : vector<8x4xf32>
    %112 = tpu.matmul %110, %111, %cst_58 {dimension_numbers = #tpu.dot_dimension_numbers<[1], [0], [0], [1], [0, 0, 1, 1], [], []>} : vector<8x256xbf16>, vector<256x4xbf16>, vector<8x4xf32> -> vector<8x4xf32>
    %c0_59 = arith.constant 0 : index
    %c0_60 = arith.constant 0 : index
    %113 = vector.load %arg9[%c0_59, %c0_60] : memref<1x4xf32, #tpu.memory_space<vmem>>, vector<1x4xf32>
    %114 = vector.broadcast %113 : vector<1x4xf32> to vector<8x4xf32>
    %115 = arith.addf %112, %114 : vector<8x4xf32>
    %c0_61 = arith.constant 0 : index
    %c0_62 = arith.constant 0 : index
    %116 = vector.load %arg10[%c0_61, %c0_62] : memref<8x4xf32, #tpu.memory_space<vmem>>, vector<8x4xf32>
    tpu.vector_store %arg10[%c0_61, %c0_62], %115 {strides = array<i32>} : memref<8x4xf32, #tpu.memory_space<vmem>>, vector<8x4xf32>,
    return
  }
  func.func @transform_0(%arg0: i32) -> (i32, i32) {
    %c0_i32 = arith.constant 0 : i32
    %c0_i32_0 = arith.constant 0 : i32
    return %arg0, %c0_i32 : i32, i32
  }
  func.func @transform_1(%arg0: i32) -> (i32, i32) {
    %c0_i32 = arith.constant 0 : i32
    %c0_i32_0 = arith.constant 0 : i32
    %c0_i32_1 = arith.constant 0 : i32
    return %c0_i32, %c0_i32_0 : i32, i32
  }
  func.func @transform_2(%arg0: i32) -> (i32, i32) {
    %c0_i32 = arith.constant 0 : i32
    %c0_i32_0 = arith.constant 0 : i32
    %c0_i32_1 = arith.constant 0 : i32
    return %c0_i32, %c0_i32_0 : i32, i32
  }
  func.func @transform_3(%arg0: i32) -> (i32, i32) {
    %c0_i32 = arith.constant 0 : i32
    %c0_i32_0 = arith.constant 0 : i32
    %c0_i32_1 = arith.constant 0 : i32
    return %c0_i32, %c0_i32_0 : i32, i32
  }
  func.func @transform_4(%arg0: i32) -> (i32, i32) {
    %c0_i32 = arith.constant 0 : i32
    %c0_i32_0 = arith.constant 0 : i32
    %c0_i32_1 = arith.constant 0 : i32
    return %c0_i32, %c0_i32_0 : i32, i32
  }
  func.func @transform_5(%arg0: i32) -> (i32, i32) {
    %c0_i32 = arith.constant 0 : i32
    %c0_i32_0 = arith.constant 0 : i32
    %c0_i32_1 = arith.constant 0 : i32
    return %c0_i32, %c0_i32_0 : i32, i32
  }
  func.func @transform_6(%arg0: i32) -> (i32, i32) {
    %c0_i32 = arith.constant 0 : i32
    %c0_i32_0 = arith.constant 0 : i32
    %c0_i32_1 = arith.constant 0 : i32
    return %c0_i32, %c0_i32_0 : i32, i32
  }
  func.func @transform_7(%arg0: i32) -> (i32, i32) {
    %c0_i32 = arith.constant 0 : i32
    %c0_i32_0 = arith.constant 0 : i32
    %c0_i32_1 = arith.constant 0 : i32
    return %c0_i32, %c0_i32_0 : i32, i32
  }
  func.func @transform_8(%arg0: i32) -> (i32, i32) {
    %c0_i32 = arith.constant 0 : i32
    %c0_i32_0 = arith.constant 0 : i32
    %c0_i32_1 = arith.constant 0 : i32
    return %c0_i32, %c0_i32_0 : i32, i32
  }
  func.func @transform_9(%arg0: i32) -> (i32, i32) {
    %c0_i32 = arith.constant 0 : i32
    %c0_i32_0 = arith.constant 0 : i32
    return %arg0, %c0_i32 : i32, i32
  }
}

</mosaic_0001>

<bundles_post_ra>
// kernel: resistor_classifier_forward.1
= control target key start
LH: loop header
LB: loop body
LE: loop exit
PB: predicated region body
PF: predicated region fallthrough
CT: control target
= control target key end

     0   :  { %vm484_vm0 = vcmask 1044480   ;;  %vm485_vm1 = vcmask 1045504   ;;  %v3256_v2 = vmov 65535   ;;  %vm360_vm2 = vcmask 613376   ;;  %s4461_s1 = inlined_call_operand.vmem [shape: bf16[75,32], index: 1, kind: input, shape index: {}]   ;;  %s4462_s2 = inlined_call_operand.vmem [shape: f32[1,32], index: 2, kind: input, shape index: {}]   ;;  %s4463_s0 = inlined_call_operand.vmem [shape: bf16[648,75], index: 0, kind: input, shape index: {}]   ;;  %s4464_s3 = inlined_call_operand.vmem [shape: bf16[288,64], index: 3, kind: input, shape index: {}]   ;;  %s4465_s4 = inlined_call_operand.vmem [shape: f32[1,64], index: 4, kind: input, shape index: {}]   ;;  %s4466_s5 = inlined_call_operand.vmem [shape: bf16[576,256], index: 5, kind: input, shape index: {}]   ;;  %s4467_s8 = inlined_call_operand.vmem [shape: f32[1,4], index: 8, kind: input, shape index: {}]   ;;  %s4468_s7 = inlined_call_operand.vmem [shape: bf16[256,4], index: 7, kind: input, shape index: {}]   ;;  %s4469_s6 = inlined_call_operand.vmem [shape: f32[1,256], index: 6, kind: input, shape index: {}]   ;;  %s4470_s9 = inlined_call_operand.vmem [shape: f32[8,4], index: 9, kind: output, shape index: {}]  }
   0x1   :  { %v2563_v0 = vld [vmem:[%s4461_s1 + $0x20] sm:$0xf]  ;;  %v3137_v1 = vld [vmem:[%s4461_s1 + $0x20] sm:$0x30]  ;;  %v486_v3 = vsel %vm484_vm0, 4294967295, %v3256_v2  ;;  %v3136_v7 = vld [vmem:[%s4461_s1 + $0x18] sm:$0xff] }
   0x2   :  { %v2564_v4 = vor.u32 %v3137_v1, %v2563_v0  ;;  %v487_v5 = vsel %vm485_vm1, %v486_v3, 0  ;;  %v3135_v8 = vld [vmem:[%s4461_s1 + $0x10] sm:$0xff]  ;;  %v3134_v9 = vld [vmem:[%s4461_s1 + $0x8] sm:$0xff]  ;;  %v3133_v10 = vld [vmem:[%s4461_s1] sm:$0xff]  ;;  %vm815_vm3 = vcmask 261120   ;;  %vm1550_vm4 = vcmask 523264  }
   0x3   :  { %v3093_v11 = vld [vmem:[%s4463_s0] sm:$0xff]  ;;  %v3094_v12 = vld [vmem:[%s4463_s0 + $0x8] sm:$0xff]  ;;  %v3095_v13 = vld [vmem:[%s4463_s0 + $0x10] sm:$0xff]  ;;  %vm2379_vm5 = vcmask 31744  }
   0x4   :  { %v489_v6 = vand.u32 %v2564_v4, %v487_v5  ;;  %v3096_v14 = vld [vmem:[%s4463_s0 + $0x18] sm:$0xff]  ;;  %v3097_v15 = vld [vmem:[%s4463_s0 + $0x20] sm:$0xff]  ;;  %v3098_v16 = vld [vmem:[%s4463_s0 + $0x28] sm:$0xff] }
   0x5   :  { %v3099_v17 = vld [vmem:[%s4463_s0 + $0x30] sm:$0xff]  ;;  %v3139_v18 = vld [vmem:[%s4464_s3 + $0x8] sm:$0xff]  ;;  %v3138_v19 = vld [vmem:[%s4464_s3] sm:$0xff] }
   0x6   :  { %494 = vmatpush.bf16.msra.mxu0 %v489_v6  ;;  %3244 = vmatpush.bf16.msra.mxu3 %v489_v6  ;;  %v3100_v20 = vld [vmem:[%s4463_s0 + $0x38] sm:$0xff]  ;;  %v3101_v21 = vld [vmem:[%s4463_s0 + $0x40] sm:$0xff]  ;;  %v3102_v30 = vld [vmem:[%s4463_s0 + $0x48] sm:$0xff] }
   0x7   :  { %897 = vmatpush.bf16.msra.mxu2 %v3139_v18  ;;  %v3369_v23 = vld [vmem:[%s4462_s2] ss:$0 sm:$0xff]  ;;  %v3103_v38 = vld [vmem:[%s4463_s0 + $0x50] sm:$0xff]  ;;  %v3141_v46 = vld [vmem:[%s4464_s3 + $0x18] sm:$0xff] }
   0x8   :  { %v3104_v47 = vld [vmem:[%s4463_s0 + $0x58] sm:$0xff]  ;;  %837 = vmatpush.bf16.msra.mxu1 %v3141_v46  ;;  %v3140_v49 = vld [vmem:[%s4464_s3 + $0x10] sm:$0xff]  ;;  %v3105_v56 = vld [vmem:[%s4463_s0 + $0x60] sm:$0xff] }
   0x9   :  { %v3106_v63 = vld [vmem:[%s4463_s0 + $0x68] sm:$0xff] }
   0xa   :  { %495 = vmatpush.bf16.msra.mxu0 %v3136_v7  ;;  %3245 = vmatpush.bf16.msra.mxu3 %v3136_v7  ;;  %v3107_v7 = vld [vmem:[%s4463_s0 + $0x70] sm:$0xff] }
   0xb   :  { %898 = vmatpush.bf16.msra.mxu2 %v3138_v19 }
   0xc   :  { %838 = vmatpush.bf16.msra.mxu1 %v3140_v49 }
   0xe   :  { %496 = vmatpush.bf16.msra.mxu0 %v3135_v8  ;;  %3246 = vmatpush.bf16.msra.mxu3 %v3135_v8 }
  0x12   :  { %497 = vmatpush.bf16.msra.mxu0 %v3134_v9  ;;  %3247 = vmatpush.bf16.msra.mxu3 %v3134_v9 }
  0x16   :  { %498 = vmatpush.bf16.msra.mxu0 %v3133_v10  ;;  %3248 = vmatpush.bf16.msra.mxu3 %v3133_v10 }
  0x19   :  { %2565 = vmatmul.msk.bf16.vlgmr.msra.gmra.mxu0 %vm360_vm2, %v3093_v11 }
  0x29   :  { %2566 = vmatmul.msk.bf16.gmra.mxu0 %vm360_vm2, %v3094_v12 }
  0x39   :  { %2567 = vmatmul.msk.bf16.gmra.mxu0 %vm360_vm2, %v3095_v13 }
  0x49   :  { %2568 = vmatmul.msk.bf16.gmra.mxu0 %vm360_vm2, %v3096_v14  ;;  %v3120_v14 = vld [vmem:[%s4463_s0 + $0xd8] sm:$0xff] }
  0x4a   :  { %2592 = vmatmul.msk.bf16.vlgmr.msra.gmra.mxu3 %vm360_vm2, %v3120_v14 }
  0x59   :  { %2569 = vmatmul.msk.bf16.gmra.mxu0 %vm360_vm2, %v3097_v15 }
  0x69   :  { %2570 = vmatmul.msk.bf16.gmra.mxu0 %vm360_vm2, %v3098_v16  ;;  %v3108_v16 = vld [vmem:[%s4463_s0 + $0x78] sm:$0xff] }
  0x79   :  { %2571 = vmatmul.msk.bf16.gmra.mxu0 %vm360_vm2, %v3099_v17 }
  0x89   :  { %2572 = vmatmul.msk.bf16.gmra.mxu0 %vm360_vm2, %v3100_v20 }
  0x96   :  { %v500_v22 = vpop.f32.mrf.mxu0 }
  0x97   :  { %v501_v24 = vadd.f32 %v3369_v23, %v500_v22 }
  0x99   :  { %2573 = vmatmul.msk.bf16.gmra.mxu0 %vm360_vm2, %v3101_v21  ;;  %v704_v27 = vmax.f32 %v501_v24, 0.0  ;;  %v3121_v24 = vld [vmem:[%s4463_s0 + $0xe0] sm:$0xff] }
  0x9a   :  { %2593 = vmatmul.msk.bf16.gmra.mxu3 %vm360_vm2, %v3121_v24  ;;  %v3144_v24 = vld [vmem:[%s4464_s3 + $0x30] sm:$0xff] }
  0x9e   :  { %v502_v25 = vpop.f32.mrf.mxu0 }
  0x9f   :  { %v503_v26 = vadd.f32 %v3369_v23, %v502_v25  ;;  %v3143_v25 = vld [vmem:[%s4464_s3 + $0x28] sm:$0xff] }
  0xa0   :  { %966 = vmatpush.bf16.msrb.mxu1 %v3143_v25 }
  0xa1   :  { %v705_v28 = vmax.f32 %v503_v26, 0.0 }
  0xa3   :  { %v785_v29 = vpack.c.bf16 %v705_v28, %v704_v27  ;;  %v3109_v27 = vld [vmem:[%s4463_s0 + $0x80] sm:$0xff] }
  0xa5   :  { %2627 = vmatmul.msk.bf16.vlgmr.msra.gmra.mxu2 %vm815_vm3, %v785_v29 }
  0xa6   :  { %v505_v31 = vpop.f32.mrf.mxu0 }
  0xa7   :  { %v506_v32 = vadd.f32 %v3369_v23, %v505_v31 }
  0xa9   :  { %2574 = vmatmul.msk.bf16.gmra.mxu0 %vm360_vm2, %v3102_v30  ;;  %v706_v35 = vmax.f32 %v506_v32, 0.0  ;;  %v3142_v30 = vld [vmem:[%s4464_s3 + $0x20] sm:$0xff] }
  0xaa   :  { %967 = vmatpush.bf16.msrb.mxu1 %v3142_v30 }
  0xae   :  { %v507_v33 = vpop.f32.mrf.mxu0 }
  0xaf   :  { %v508_v34 = vadd.f32 %v3369_v23, %v507_v33 }
  0xb1   :  { %v707_v36 = vmax.f32 %v508_v34, 0.0 }
  0xb3   :  { %v786_v37 = vpack.c.bf16 %v707_v36, %v706_v35  ;;  %v3122_v35 = vld [vmem:[%s4463_s0 + $0xe8] sm:$0xff] }
  0xb4   :  { %2594 = vmatmul.msk.bf16.gmra.mxu3 %vm360_vm2, %v3122_v35 }
  0xb5   :  { %2628 = vmatmul.msk.bf16.gmra.mxu2 %vm815_vm3, %v786_v37  ;;  %v3110_v37 = vld [vmem:[%s4463_s0 + $0x88] sm:$0xff] }
  0xb6   :  { %v510_v39 = vpop.f32.mrf.mxu0 }
  0xb7   :  { %v511_v40 = vadd.f32 %v3369_v23, %v510_v39 }
  0xb9   :  { %2575 = vmatmul.msk.bf16.gmra.mxu0 %vm360_vm2, %v3103_v38  ;;  %v708_v43 = vmax.f32 %v511_v40, 0.0 }
  0xbe   :  { %v512_v41 = vpop.f32.mrf.mxu0 }
  0xbf   :  { %v513_v42 = vadd.f32 %v3369_v23, %v512_v41 }
  0xc1   :  { %v709_v44 = vmax.f32 %v513_v42, 0.0 }
  0xc3   :  { %v787_v45 = vpack.c.bf16 %v709_v44, %v708_v43  ;;  %v3123_v44 = vld [vmem:[%s4463_s0 + $0xf0] sm:$0xff] }
  0xc4   :  { %2595 = vmatmul.msk.bf16.gmra.mxu3 %vm360_vm2, %v3123_v44 }
  0xc5   :  { %2629 = vmatmul.msk.bf16.gmra.mxu2 %vm815_vm3, %v787_v45 }
  0xc6   :  { %v515_v48 = vpop.f32.mrf.mxu0 }
  0xc7   :  { %v516_v50 = vadd.f32 %v3369_v23, %v515_v48 }
  0xc9   :  { %2576 = vmatmul.msk.bf16.gmra.mxu0 %vm360_vm2, %v3104_v47  ;;  %v710_v53 = vmax.f32 %v516_v50, 0.0  ;;  %v3111_v47 = vld [vmem:[%s4463_s0 + $0x90] sm:$0xff] }
  0xce   :  { %v517_v51 = vpop.f32.mrf.mxu0 }
  0xcf   :  { %v518_v52 = vadd.f32 %v3369_v23, %v517_v51 }
  0xd1   :  { %v711_v54 = vmax.f32 %v518_v52, 0.0 }
  0xd3   :  { %v788_v55 = vpack.c.bf16 %v711_v54, %v710_v53 }
  0xd5   :  { %2630 = vmatmul.msk.bf16.gmra.mxu2 %vm815_vm3, %v788_v55  ;;  %v3124_v55 = vld [vmem:[%s4463_s0 + $0xf8] sm:$0xff] }
  0xd6   :  { %v520_v57 = vpop.f32.mrf.mxu0  ;;  %2596 = vmatmul.msk.bf16.gmra.mxu3 %vm360_vm2, %v3124_v55 }
  0xd7   :  { %v521_v58 = vadd.f32 %v3369_v23, %v520_v57 }
  0xd9   :  { %2577 = vmatmul.msk.bf16.gmra.mxu0 %vm360_vm2, %v3105_v56  ;;  %v712_v60 = vmax.f32 %v521_v58, 0.0  ;;  %v3112_v58 = vld [vmem:[%s4463_s0 + $0x98] sm:$0xff] }
  0xdb   :  { %v789_v61 = vpack.c.bf16 %v712_v60, %v712_v60 }
  0xde   :  { %v522_v59 = vpop.f32.mrf.mxu0 }
  0xdf   :  { %v523_v62 = vadd.f32 %v3369_v23, %v522_v59 }
  0xe1   :  { %v713_v2 = vmax.f32 %v523_v62, 0.0 }
  0xe5   :  { %2631 = vmatmul.msk.bf16.gmra.mxu2 %vm815_vm3, %v789_v61 }
  0xe6   :  { %v525_v0 = vpop.f32.mrf.mxu0 }
  0xe7   :  { %v526_v1 = vadd.f32 %v3369_v23, %v525_v0  ;;  %v3149_v0 = vld [vmem:[%s4464_s3 + $0x58] sm:$0xff] }
  0xe8   :  { %3249 = vmatpush.bf16.msrb.mxu3 %v3149_v0 }
  0xe9   :  { %v714_v3 = vmax.f32 %v526_v1, 0.0  ;;  %2578 = vmatmul.msk.bf16.gmra.mxu0 %vm360_vm2, %v3106_v63 }
  0xeb   :  { %v794_v4 = vpack.c.bf16 %v714_v3, %v713_v2 }
  0xed   :  { %2614 = vmatmul.msk.bf16.vlgmr.msra.gmra.mxu1 %vm815_vm3, %v794_v4  ;;  %v3125_v4 = vld [vmem:[%s4463_s0 + $0x100] sm:$0xff] }
  0xee   :  { %v527_v5 = vpop.f32.mrf.mxu0  ;;  %2597 = vmatmul.msk.bf16.gmra.mxu3 %vm360_vm2, %v3125_v4 }
  0xef   :  { %v528_v6 = vadd.f32 %v3369_v23, %v527_v5  ;;  %v3147_v5 = vld [vmem:[%s4464_s3 + $0x48] sm:$0xff] }
  0xf0   :  { %1122 = vmatpush.bf16.msrb.mxu2 %v3147_v5 }
  0xf1   :  { %v715_v10 = vmax.f32 %v528_v6, 0.0 }
  0xf6   :  { %v530_v8 = vpop.f32.mrf.mxu0 }
  0xf7   :  { %v531_v9 = vadd.f32 %v3369_v23, %v530_v8 }
  0xf9   :  { %v716_v11 = vmax.f32 %v531_v9, 0.0  ;;  %2579 = vmatmul.msk.bf16.gmra.mxu0 %vm360_vm2, %v3107_v7  ;;  %v3113_v7 = vld [vmem:[%s4463_s0 + $0xa0] sm:$0xff] }
  0xfb   :  { %v795_v12 = vpack.c.bf16 %v716_v11, %v715_v10 }
  0xfd   :  { %2615 = vmatmul.msk.bf16.gmra.mxu1 %vm815_vm3, %v795_v12 }
  0xfe   :  { %v532_v13 = vpop.f32.mrf.mxu0 }
  0xff   :  { %v533_v15 = vadd.f32 %v3369_v23, %v532_v13 }
 0x101   :  { %v717_v19 = vmax.f32 %v533_v15, 0.0 }
 0x106   :  { %v535_v17 = vpop.f32.mrf.mxu0 }
 0x107   :  { %v536_v18 = vadd.f32 %v3369_v23, %v535_v17  ;;  %v3145_v17 = vld [vmem:[%s4464_s3 + $0x38] sm:$0xff] }
 0x108   :  { %1044 = vmatpush.bf16.msra.mxu1 %v3145_v17 }
 0x109   :  { %v718_v20 = vmax.f32 %v536_v18, 0.0  ;;  %2580 = vmatmul.msk.bf16.gmra.mxu0 %vm360_vm2, %v3108_v16  ;;  %v3126_v16 = vld [vmem:[%s4463_s0 + $0x108] sm:$0xff] }
 0x10a   :  { %2598 = vmatmul.msk.bf16.gmra.mxu3 %vm360_vm2, %v3126_v16 }
 0x10b   :  { %v796_v21 = vpack.c.bf16 %v718_v20, %v717_v19  ;;  %v3114_v19 = vld [vmem:[%s4463_s0 + $0xa8] sm:$0xff] }
 0x10c   :  { %1045 = vmatpush.bf16.msra.mxu1 %v3144_v24 }
 0x10d   :  { %2616 = vmatmul.msk.bf16.gmra.mxu1 %vm815_vm3, %v796_v21 }
 0x10e   :  { %v537_v22 = vpop.f32.mrf.mxu0 }
 0x10f   :  { %v538_v26 = vadd.f32 %v3369_v23, %v537_v22 }
 0x111   :  { %v719_v31 = vmax.f32 %v538_v26, 0.0 }
 0x116   :  { %v540_v28 = vpop.f32.mrf.mxu0 }
 0x117   :  { %v541_v29 = vadd.f32 %v3369_v23, %v540_v28 }
 0x119   :  { %v720_v32 = vmax.f32 %v541_v29, 0.0  ;;  %2581 = vmatmul.msk.bf16.gmra.mxu0 %vm360_vm2, %v3109_v27 }
 0x11b   :  { %v797_v33 = vpack.c.bf16 %v720_v32, %v719_v31 }
 0x11d   :  { %2617 = vmatmul.msk.bf16.gmra.mxu1 %vm815_vm3, %v797_v33  ;;  %v3127_v33 = vld [vmem:[%s4463_s0 + $0x110] sm:$0xff] }
 0x11e   :  { %v542_v34 = vpop.f32.mrf.mxu0  ;;  %2599 = vmatmul.msk.bf16.gmra.mxu3 %vm360_vm2, %v3127_v33 }
 0x11f   :  { %v543_v36 = vadd.f32 %v3369_v23, %v542_v34  ;;  %v3115_v34 = vld [vmem:[%s4463_s0 + $0xb0] sm:$0xff] }
 0x121   :  { %v721_v39 = vmax.f32 %v543_v36, 0.0 }
 0x123   :  { %v798_v41 = vpack.c.bf16 %v721_v39, %v721_v39 }
 0x126   :  { %v545_v38 = vpop.f32.mrf.mxu0 }
 0x127   :  { %v546_v46 = vadd.f32 %v3369_v23, %v545_v38 }
 0x128   :  { %v3458_v40 = vpop.f32.mrf.mxu2 }
 0x129   :  { %2582 = vmatmul.msk.bf16.gmra.mxu0 %vm360_vm2, %v3110_v37  ;;  %v722_v51 = vmax.f32 %v546_v46, 0.0 }
 0x12d   :  { %2618 = vmatmul.msk.bf16.gmra.mxu1 %vm815_vm3, %v798_v41 }
 0x12e   :  { %v547_v42 = vpop.f32.mrf.mxu0 }
 0x12f   :  { %v548_v45 = vadd.f32 %v3369_v23, %v547_v42 }
 0x130   :  { %v3462_v43 = vpop.f32.mrf.mxu2 }
 0x131   :  { %v723_v49 = vmax.f32 %v548_v45, 0.0  ;;  %v3128_v45 = vld [vmem:[%s4463_s0 + $0x118] sm:$0xff] }
 0x132   :  { %2600 = vmatmul.msk.bf16.gmra.mxu3 %vm360_vm2, %v3128_v45 }
 0x133   :  { %v924_v52 = vpack.c.bf16 %v723_v49, %v722_v51 }
 0x136   :  { %v550_v48 = vpop.f32.mrf.mxu0 }
 0x137   :  { %v551_v57 = vadd.f32 %v3369_v23, %v550_v48 }
 0x138   :  { %v3473_v50 = vpop.f32.mrf.mxu2 }
 0x139   :  { %2583 = vmatmul.msk.bf16.gmra.mxu0 %vm360_vm2, %v3111_v47  ;;  %v724_v62 = vmax.f32 %v551_v57, 0.0  ;;  %v3116_v47 = vld [vmem:[%s4463_s0 + $0xb8] sm:$0xff] }
 0x13d   :  { %2640 = vmatmul.msk.bf16.vlgmr.msrb.gmra.mxu1 %vm815_vm3, %v924_v52 }
 0x13e   :  { %v552_v53 = vpop.f32.mrf.mxu0 }
 0x13f   :  { %v553_v56 = vadd.f32 %v3369_v23, %v552_v53 }
 0x140   :  { %v3477_v54 = vpop.f32.mrf.mxu2 }
 0x141   :  { %v725_v60 = vmax.f32 %v553_v56, 0.0 }
 0x143   :  { %v925_v63 = vpack.c.bf16 %v725_v60, %v724_v62  ;;  %v3117_v62 = vld [vmem:[%s4463_s0 + $0xc0] sm:$0xff] }
 0x146   :  { %v555_v59 = vpop.f32.mrf.mxu0 }
 0x147   :  { %v556_v6 = vadd.f32 %v3369_v23, %v555_v59 }
 0x148   :  { %v3488_v61 = vpop.f32.mrf.mxu2 }
 0x149   :  { %2584 = vmatmul.msk.bf16.gmra.mxu0 %vm360_vm2, %v3112_v58  ;;  %v726_v11 = vmax.f32 %v556_v6, 0.0  ;;  %v3129_v6 = vld [vmem:[%s4463_s0 + $0x120] sm:$0xff] }
 0x14a   :  { %2601 = vmatmul.msk.bf16.gmra.mxu3 %vm360_vm2, %v3129_v6 }
 0x14d   :  { %2641 = vmatmul.msk.bf16.gmra.mxu1 %vm815_vm3, %v925_v63 }
 0x14e   :  { %v557_v1 = vpop.f32.mrf.mxu0 }
 0x14f   :  { %v558_v3 = vadd.f32 %v3369_v23, %v557_v1 }
 0x150   :  { %v3495_v2 = vpop.f32.mrf.mxu2 }
 0x151   :  { %v727_v9 = vmax.f32 %v558_v3, 0.0 }
 0x153   :  { %v926_v12 = vpack.c.bf16 %v727_v9, %v726_v11 }
 0x156   :  { %v560_v8 = vpop.f32.mrf.mxu0 }
 0x157   :  { %v561_v18 = vadd.f32 %v3369_v23, %v560_v8 }
 0x158   :  { %v3509_v10 = vpop.f32.mrf.mxu2 }
 0x159   :  { %2585 = vmatmul.msk.bf16.gmra.mxu0 %vm360_vm2, %v3113_v7  ;;  %v728_v25 = vmax.f32 %v561_v18, 0.0 }
 0x15d   :  { %2642 = vmatmul.msk.bf16.gmra.mxu1 %vm815_vm3, %v926_v12 }
 0x15e   :  { %v562_v13 = vpop.f32.mrf.mxu0 }
 0x15f   :  { %v563_v15 = vadd.f32 %v3369_v23, %v562_v13 }
 0x160   :  { %v3513_v14 = vpop.f32.mrf.mxu2 }
 0x161   :  { %v729_v21 = vmax.f32 %v563_v15, 0.0 }
 0x163   :  { %v927_v28 = vpack.c.bf16 %v729_v21, %v728_v25 }
 0x166   :  { %v565_v20 = vpop.f32.mrf.mxu0 }
 0x167   :  { %v566_v32 = vadd.f32 %v3369_v23, %v565_v20 }
 0x168   :  { %v3527_v22 = vpop.f32.mrf.mxu2 }
 0x169   :  { %2586 = vmatmul.msk.bf16.gmra.mxu0 %vm360_vm2, %v3114_v19  ;;  %v730_v36 = vmax.f32 %v566_v32, 0.0 }
 0x16a   :  { %v840_v26 = vpop.f32.mrf.mxu1 }
 0x16b   :  { %v3534_v27 = vadd.f32 %v3458_v40, %v840_v26  ;;  %v928_v38 = vpack.c.bf16 %v730_v36, %v730_v36  ;;  %v3146_v40 = vld [vmem:[%s4464_s3 + $0x40] sm:$0xff] }
 0x16c   :  { %1123 = vmatpush.bf16.msrb.mxu2 %v3146_v40 }
 0x16d   :  { %2643 = vmatmul.msk.bf16.gmra.mxu1 %vm815_vm3, %v927_v28  ;;  %v3130_v28 = vld [vmem:[%s4463_s0 + $0x128] sm:$0xff] }
 0x16e   :  { %v567_v29 = vpop.f32.mrf.mxu0  ;;  %2602 = vmatmul.msk.bf16.gmra.mxu3 %vm360_vm2, %v3130_v28 }
 0x16f   :  { %v568_v46 = vadd.f32 %v3369_v23, %v567_v29  ;;  %v3151_v29 = vld [vmem:[%s4464_s3 + $0x68] sm:$0xff] }
 0x170   :  { %v922_v30 = vpop.f32.mrf.mxu2  ;;  %1200 = vmatpush.bf16.msra.mxu2 %v3149_v0  ;;  %1278 = vmatpush.bf16.msrb.mxu1 %v3151_v29 }
 0x171   :  { %v731_v51 = vmax.f32 %v568_v46, 0.0 }
 0x172   :  { %v3537_v31 = vpop.f32.mrf.mxu1 }
 0x176   :  { %v570_v35 = vpop.f32.mrf.mxu0 }
 0x177   :  { %v571_v44 = vadd.f32 %v3369_v23, %v570_v35  ;;  %v3150_v35 = vld [vmem:[%s4464_s3 + $0x60] sm:$0xff] }
 0x178   :  { %1279 = vmatpush.bf16.msrb.mxu1 %v3150_v35 }
 0x179   :  { %2587 = vmatmul.msk.bf16.gmra.mxu0 %vm360_vm2, %v3115_v34  ;;  %v732_v49 = vmax.f32 %v571_v44, 0.0 }
 0x17a   :  { %v845_v37 = vpop.f32.mrf.mxu1 }
 0x17b   :  { %v3549_v39 = vadd.f32 %v3473_v50, %v845_v37  ;;  %v3566_v50 = vpop.f32.mrf.mxu3  ;;  %v1002_v53 = vpack.c.bf16 %v732_v49, %v731_v51  ;;  %v3148_v37 = vld [vmem:[%s4464_s3 + $0x50] sm:$0xff] }
 0x17c   :  { %3250 = vmatpush.bf16.msrb.mxu3 %v3148_v37  ;;  %1201 = vmatpush.bf16.msra.mxu2 %v3148_v37 }
 0x17d   :  { %2644 = vmatmul.msk.bf16.gmra.mxu1 %vm815_vm3, %v928_v38 }
 0x17e   :  { %v572_v41 = vpop.f32.mrf.mxu0 }
 0x17f   :  { %v573_v60 = vadd.f32 %v3369_v23, %v572_v41 }
 0x182   :  { %v3555_v42 = vpop.f32.mrf.mxu1 }
 0x183   :  { %v3573_v57 = vpop.f32.mrf.mxu3 }
 0x186   :  { %v575_v48 = vpop.f32.mrf.mxu0 }
 0x187   :  { %v576_v59 = vadd.f32 %v3369_v23, %v575_v48  ;;  %v903_v48 = vadd.f32 %v3462_v43, %v3537_v31 }
 0x189   :  { %2588 = vmatmul.msk.bf16.gmra.mxu0 %vm360_vm2, %v3116_v47  ;;  %v734_v0 = vmax.f32 %v576_v59, 0.0  ;;  %v3131_v59 = vld [vmem:[%s4463_s0 + $0x130] sm:$0xff] }
 0x18a   :  { %v850_v52 = vpop.f32.mrf.mxu1  ;;  %2603 = vmatmul.msk.bf16.gmra.mxu3 %vm360_vm2, %v3131_v59 }
 0x18b   :  { %v3570_v55 = vadd.f32 %v3488_v61, %v850_v52  ;;  %v3582_v1 = vpop.f32.mrf.mxu3  ;;  %v733_v61 = vmax.f32 %v573_v60, 0.0 }
 0x18d   :  { %2653 = vmatmul.msk.bf16.vlgmr.msra.gmra.mxu1 %vm815_vm3, %v1002_v53  ;;  %v1003_v4 = vpack.c.bf16 %v734_v0, %v733_v61 }
 0x18e   :  { %v577_v56 = vpop.f32.mrf.mxu0 }
 0x18f   :  { %v578_v12 = vadd.f32 %v3369_v23, %v577_v56 }
 0x191   :  { %v735_v17 = vmax.f32 %v578_v12, 0.0 }
 0x192   :  { %v3575_v58 = vpop.f32.mrf.mxu1 }
 0x193   :  { %v3593_v8 = vpop.f32.mrf.mxu3 }
 0x196   :  { %v580_v63 = vpop.f32.mrf.mxu0 }
 0x197   :  { %v581_v11 = vadd.f32 %v3369_v23, %v580_v63 }
 0x199   :  { %2589 = vmatmul.msk.bf16.gmra.mxu0 %vm360_vm2, %v3117_v62  ;;  %v736_v15 = vmax.f32 %v581_v11, 0.0 }
 0x19a   :  { %v855_v3 = vpop.f32.mrf.mxu1 }
 0x19b   :  { %v3586_v5 = vadd.f32 %v3509_v10, %v855_v3  ;;  %v3118_v10 = vld [vmem:[%s4463_s0 + $0xc8] sm:$0xff]  ;;  %v3602_v16 = vpop.f32.mrf.mxu3  ;;  %v1004_v19 = vpack.c.bf16 %v736_v15, %v735_v17 }
 0x19d   :  { %2654 = vmatmul.msk.bf16.gmra.mxu1 %vm815_vm3, %v1003_v4 }
 0x19e   :  { %v582_v7 = vpop.f32.mrf.mxu0 }
 0x19f   :  { %v583_v30 = vadd.f32 %v3369_v23, %v582_v7  ;;  %v908_v7 = vadd.f32 %v3477_v54, %v3555_v42 }
 0x1a1   :  { %v737_v36 = vmax.f32 %v583_v30, 0.0  ;;  %v913_v30 = vadd.f32 %v3495_v2, %v3575_v58  ;;  %v113_v2 = vld [vmem:[%s4463_s0 + $0x140] sm:$0xf] }
 0x1a2   :  { %v3595_v9 = vpop.f32.mrf.mxu1  ;;  %v289_v58 = vunpack.c.l.b16 %v113_v2 }
 0x1a3   :  { %v3609_v24 = vpop.f32.mrf.mxu3 }
 0x1a6   :  { %v585_v13 = vpop.f32.mrf.mxu0 }
 0x1a7   :  { %v586_v26 = vadd.f32 %v3369_v23, %v585_v13  ;;  %v636_v13 = vadd.f32 %v3369_v23, %v3566_v50 }
 0x1a9   :  { %2590 = vmatmul.msk.bf16.gmra.mxu0 %vm360_vm2, %v3118_v10  ;;  %v738_v33 = vmax.f32 %v586_v26, 0.0  ;;  %v758_v42 = vmax.f32 %v636_v13, 0.0 }
 0x1aa   :  { %v860_v18 = vpop.f32.mrf.mxu1 }
 0x1ab   :  { %v3606_v20 = vadd.f32 %v3527_v22, %v860_v18  ;;  %v3119_v22 = vld [vmem:[%s4463_s0 + $0xd0] sm:$0xff]  ;;  %v3623_v34 = vpop.f32.mrf.mxu3  ;;  %v1005_v40 = vpack.c.bf16 %v738_v33, %v737_v36  ;;  %v3132_v18 = vld [vmem:[%s4463_s0 + $0x138] sm:$0xff]  ;;  %v641_v36 = vadd.f32 %v3369_v23, %v3582_v1 }
 0x1ac   :  { %2604 = vmatmul.msk.bf16.gmra.mxu3 %vm360_vm2, %v3132_v18  ;;  %v651_v18 = vadd.f32 %v3369_v23, %v3623_v34 }
 0x1ad   :  { %2655 = vmatmul.msk.bf16.gmra.mxu1 %vm815_vm3, %v1004_v19 }
 0x1ae   :  { %v587_v21 = vpop.f32.mrf.mxu0 }
 0x1b2   :  { %v862_v25 = vpop.f32.mrf.mxu1 }
 0x1b3   :  { %v3638_v47 = vpop.f32.mrf.mxu3 }
 0x1b6   :  { %v590_v32 = vpop.f32.mrf.mxu0 }
 0x1b7   :  { %v591_v44 = vadd.f32 %v3369_v23, %v590_v32 }
 0x1b9   :  { %2591 = vmatmul.msk.bf16.gmra.mxu0 %vm360_vm2, %v3119_v22  ;;  %v740_v49 = vmax.f32 %v591_v44, 0.0  ;;  %v760_v44 = vmax.f32 %v641_v36, 0.0 }
 0x1ba   :  { %v969_v38 = vpop.f32.mrf.mxu1 }
 0x1bb   :  { %v3633_v41 = vadd.f32 %v969_v38, %v3534_v27  ;;  %v588_v27 = vadd.f32 %v3369_v23, %v587_v21  ;;  %v3650_v63 = vpop.f32.mrf.mxu3 }
 0x1bc   :  { %v656_v36 = vadd.f32 %v3369_v23, %v3650_v63 }
 0x1bd   :  { %2656 = vmatmul.msk.bf16.gmra.mxu1 %vm815_vm3, %v1005_v40  ;;  %v739_v62 = vmax.f32 %v588_v27, 0.0 }
 0x1be   :  { %v592_v45 = vpop.f32.mrf.mxu0 }
 0x1bf   :  { %v593_v46 = vadd.f32 %v3369_v23, %v592_v45  ;;  %v1006_v31 = vpack.c.bf16 %v739_v62, %v739_v62  ;;  %v648_v62 = vadd.f32 %v3369_v23, %v3609_v24 }
 0x1c1   :  { %v741_v51 = vmax.f32 %v593_v46, 0.0 }
 0x1c2   :  { %v971_v52 = vpop.f32.mrf.mxu1 }
 0x1c3   :  { %v1080_v53 = vpack.c.bf16 %v741_v51, %v740_v49  ;;  %v3643_v56 = vadd.f32 %v971_v52, %v903_v48  ;;  %v3658_v6 = vpop.f32.mrf.mxu3  ;;  %v330_v49 = vpack.c.b16 %v289_v58, %v289_v58 }
 0x1c5   :  { %2666 = vmatmul.msk.bf16.vlgmr.msrb.gmra.mxu2 %vm815_vm3, %v1080_v53  ;;  %2605 = vmatmul.msk.bf16.gmra.mxu3 %vm360_vm2, %v330_v49 }
 0x1c6   :  { %v595_v60 = vpop.f32.mrf.mxu0 }
 0x1c7   :  { %v596_v61 = vadd.f32 %v3369_v23, %v595_v60 }
 0x1c9   :  { %v742_v11 = vmax.f32 %v596_v61, 0.0 }
 0x1ca   :  { %v974_v43 = vpop.f32.mrf.mxu1 }
 0x1cb   :  { %v3653_v0 = vadd.f32 %v974_v43, %v3549_v39  ;;  %v638_v39 = vadd.f32 %v3369_v23, %v3573_v57  ;;  %v3673_v21 = vpop.f32.mrf.mxu3 }
 0x1cd   :  { %2657 = vmatmul.msk.bf16.gmra.mxu1 %vm815_vm3, %v1006_v31  ;;  %v759_v19 = vmax.f32 %v638_v39, 0.0  ;;  %v3153_v31 = vld [vmem:[%s4464_s3 + $0x78] sm:$0xff] }
 0x1ce   :  { %v597_v3 = vpop.f32.mrf.mxu0  ;;  %1356 = vmatpush.bf16.msrb.mxu2 %v3153_v31 }
 0x1cf   :  { %v598_v4 = vadd.f32 %v3369_v23, %v597_v3  ;;  %v1236_v25 = vpack.c.bf16 %v759_v19, %v758_v42 }
 0x1d1   :  { %v743_v12 = vmax.f32 %v598_v4, 0.0 }
 0x1d2   :  { %v976_v10 = vpop.f32.mrf.mxu1 }
 0x1d3   :  { %v1081_v15 = vpack.c.bf16 %v743_v12, %v742_v11  ;;  %v3666_v17 = vadd.f32 %v976_v10, %v908_v7  ;;  %v3683_v35 = vpop.f32.mrf.mxu3  ;;  %v763_v7 = vmax.f32 %v648_v62, 0.0 }
 0x1d5   :  { %2667 = vmatmul.msk.bf16.gmra.mxu2 %vm815_vm3, %v1081_v15 }
 0x1d6   :  { %v600_v54 = vpop.f32.mrf.mxu0 }
 0x1d7   :  { %v601_v26 = vadd.f32 %v3369_v23, %v600_v54  ;;  %v653_v54 = vadd.f32 %v3369_v23, %v3638_v47 }
 0x1d9   :  { %v744_v22 = vmax.f32 %v601_v26, 0.0 }
 0x1da   :  { %v979_v50 = vpop.f32.mrf.mxu1 }
 0x1db   :  { %v3676_v57 = vadd.f32 %v979_v50, %v3570_v55  ;;  %v643_v55 = vadd.f32 %v3369_v23, %v3593_v8  ;;  %v3698_v8 = vpop.f32.mrf.mxu3  ;;  %v764_v50 = vmax.f32 %v651_v18, 0.0 }
 0x1dd   :  { %2692 = vmatmul.msk.bf16.vlgmr.msrb.gmra.mxu1 %vm815_vm3, %v1236_v25  ;;  %v761_v45 = vmax.f32 %v643_v55, 0.0 }
 0x1de   :  { %v602_v28 = vpop.f32.mrf.mxu0 }
 0x1df   :  { %v603_v29 = vadd.f32 %v3369_v23, %v602_v28  ;;  %v1237_v48 = vpack.c.bf16 %v761_v45, %v760_v44  ;;  %v766_v44 = vmax.f32 %v656_v36, 0.0 }
 0x1e1   :  { %v745_v32 = vmax.f32 %v603_v29, 0.0  ;;  %v1240_v2 = vpack.c.bf16 %v766_v44, %v766_v44  ;;  %v661_v44 = vadd.f32 %v3369_v23, %v3673_v21 }
 0x1e2   :  { %v981_v33 = vpop.f32.mrf.mxu1 }
 0x1e3   :  { %v1082_v37 = vpack.c.bf16 %v745_v32, %v744_v22  ;;  %v3689_v38 = vadd.f32 %v981_v33, %v913_v30  ;;  %v3714_v3 = vpop.f32.mrf.mxu3 }
 0x1e5   :  { %2668 = vmatmul.msk.bf16.gmra.mxu2 %vm815_vm3, %v1082_v37 }
 0x1e6   :  { %v605_v40 = vpop.f32.mrf.mxu0 }
 0x1e7   :  { %v606_v51 = vadd.f32 %v3369_v23, %v605_v40 }
 0x1e9   :  { %v746_v53 = vmax.f32 %v606_v51, 0.0 }
 0x1ea   :  { %v984_v46 = vpop.f32.mrf.mxu1 }
 0x1eb   :  { %v3696_v1 = vadd.f32 %v984_v46, %v3586_v5  ;;  %v646_v5 = vadd.f32 %v3369_v23, %v3602_v16  ;;  %v3721_v39 = vpop.f32.mrf.mxu3 }
 0x1ed   :  { %2693 = vmatmul.msk.bf16.gmra.mxu1 %vm815_vm3, %v1237_v48  ;;  %v762_v4 = vmax.f32 %v646_v5, 0.0 }
 0x1ee   :  { %v607_v52 = vpop.f32.mrf.mxu0 }
 0x1ef   :  { %v608_v27 = vadd.f32 %v3369_v23, %v607_v52  ;;  %v1238_v12 = vpack.c.bf16 %v763_v7, %v762_v4 }
 0x1f1   :  { %v747_v59 = vmax.f32 %v608_v27, 0.0 }
 0x1f2   :  { %v3704_v60 = vpop.f32.mrf.mxu1 }
 0x1f3   :  { %v1083_v43 = vpack.c.bf16 %v747_v59, %v746_v53  ;;  %v3728_v26 = vpop.f32.mrf.mxu3  ;;  %v3155_v59 = vld [vmem:[%s4464_s3 + $0x88] sm:$0xff] }
 0x1f4   :  { %1434 = vmatpush.bf16.msra.mxu3 %v3155_v59 }
 0x1f5   :  { %2669 = vmatmul.msk.bf16.gmra.mxu2 %vm815_vm3, %v1083_v43 }
 0x1f6   :  { %v610_v61 = vpop.f32.mrf.mxu0 }
 0x1f7   :  { %v611_v16 = vadd.f32 %v3369_v23, %v610_v61  ;;  %v3154_v61 = vld [vmem:[%s4464_s3 + $0x80] sm:$0xff] }
 0x1f8   :  { %1435 = vmatpush.bf16.msra.mxu3 %v3154_v61  ;;  %v663_v61 = vadd.f32 %v3369_v23, %v3683_v35 }
 0x1f9   :  { %v748_v13 = vmax.f32 %v611_v16, 0.0 }
 0x1fa   :  { %v989_v11 = vpop.f32.mrf.mxu1 }
 0x1fb   :  { %v3718_v10 = vadd.f32 %v989_v11, %v3606_v20  ;;  %v1084_v42 = vpack.c.bf16 %v748_v13, %v748_v13  ;;  %v765_v20 = vmax.f32 %v653_v54, 0.0  ;;  %v3740_v37 = vpop.f32.mrf.mxu3 }
 0x1fd   :  { %2694 = vmatmul.msk.bf16.gmra.mxu1 %vm815_vm3, %v1238_v12  ;;  %v1239_v28 = vpack.c.bf16 %v765_v20, %v764_v50 }
 0x1fe   :  { %v612_v24 = vpop.f32.mrf.mxu0 }
 0x1ff   :  { %v613_v34 = vadd.f32 %v3369_v23, %v612_v24 }
 0x201   :  { %v749_v32 = vmax.f32 %v613_v34, 0.0 }
 0x202   :  { %v991_v15 = vpop.f32.mrf.mxu1 }
 0x203   :  { %v3750_v63 = vpop.f32.mrf.mxu3 }
 0x205   :  { %2670 = vmatmul.msk.bf16.gmra.mxu2 %vm815_vm3, %v1084_v42 }
 0x206   :  { %v615_v19 = vpop.f32.mrf.mxu0 }
 0x207   :  { %v616_v29 = vadd.f32 %v3369_v23, %v615_v19 }
 0x209   :  { %v750_v22 = vmax.f32 %v616_v29, 0.0 }
 0x20a   :  { %v1047_v25 = vpop.f32.mrf.mxu1 }
 0x20b   :  { %v3732_v30 = vadd.f32 %v1047_v25, %v3633_v41  ;;  %v1158_v55 = vpack.c.bf16 %v750_v22, %v749_v32  ;;  %v3152_v41 = vld [vmem:[%s4464_s3 + $0x70] sm:$0xff]  ;;  %v680_v5 = vpop.f32.mrf.mxu3 }
 0x20c   :  { %1357 = vmatpush.bf16.msrb.mxu2 %v3152_v41 }
 0x20d   :  { %2695 = vmatmul.msk.bf16.gmra.mxu1 %vm815_vm3, %v1239_v28 }
 0x20e   :  { %v617_v47 = vpop.f32.mrf.mxu0 }
 0x20f   :  { %v618_v48 = vadd.f32 %v3369_v23, %v617_v47 }
 0x211   :  { %v751_v52 = vmax.f32 %v618_v48, 0.0 }
 0x212   :  { %v3736_v33 = vpop.f32.mrf.mxu1 }
 0x213   :  { %v682_v12 = vpop.f32.mrf.mxu3 }
 0x215   :  { %2679 = vmatmul.msk.bf16.vlgmr.msra.gmra.mxu2 %vm815_vm3, %v1158_v55  ;;  %v658_v55 = vadd.f32 %v3369_v23, %v3658_v6 }
 0x216   :  { %v620_v40 = vpop.f32.mrf.mxu0 }
 0x217   :  { %v621_v58 = vadd.f32 %v3369_v23, %v620_v40  ;;  %v767_v48 = vmax.f32 %v658_v55, 0.0 }
 0x219   :  { %v752_v51 = vmax.f32 %v621_v58, 0.0 }
 0x21a   :  { %v1052_v45 = vpop.f32.mrf.mxu1 }
 0x21b   :  { %v3748_v46 = vadd.f32 %v1052_v45, %v3653_v0  ;;  %v1159_v53 = vpack.c.bf16 %v752_v51, %v751_v52  ;;  %v685_v18 = vpop.f32.mrf.mxu3  ;;  %v681_v45 = vadd.f32 %v3369_v23, %v680_v5 }
 0x21c   :  { %v686_v5 = vadd.f32 %v3369_v23, %v685_v18 }
 0x21d   :  { %2696 = vmatmul.msk.bf16.gmra.mxu1 %vm815_vm3, %v1240_v2  ;;  %v683_v2 = vadd.f32 %v3369_v23, %v682_v12  ;;  %v776_v51 = vmax.f32 %v681_v45, 0.0 }
 0x21e   :  { %v622_v49 = vpop.f32.mrf.mxu0 }
 0x21f   :  { %v623_v4 = vadd.f32 %v3369_v23, %v622_v49  ;;  %v768_v49 = vmax.f32 %v661_v44, 0.0  ;;  %v777_v52 = vmax.f32 %v683_v2, 0.0 }
 0x221   :  { %v753_v16 = vmax.f32 %v623_v4, 0.0  ;;  %v1392_v21 = vpack.c.bf16 %v777_v52, %v776_v51  ;;  %v666_v4 = vadd.f32 %v3369_v23, %v3698_v8  ;;  %v673_v51 = vadd.f32 %v3369_v23, %v3728_v26 }
 0x222   :  { %v3754_v27 = vpop.f32.mrf.mxu1  ;;  %v676_v52 = vadd.f32 %v3369_v23, %v3740_v37 }
 0x223   :  { %v687_v28 = vpop.f32.mrf.mxu3 }
 0x225   :  { %2680 = vmatmul.msk.bf16.gmra.mxu2 %vm815_vm3, %v1159_v53 }
 0x226   :  { %v625_v0 = vpop.f32.mrf.mxu0 }
 0x227   :  { %v626_v43 = vadd.f32 %v3369_v23, %v625_v0  ;;  %v1314_v0 = vpack.c.bf16 %v768_v49, %v767_v48  ;;  %v2749_v49 = vld [vmem:[%s4466_s5 + $0x70] sm:$0xf] }
 0x229   :  { %v754_v11 = vmax.f32 %v626_v43, 0.0 }
 0x22a   :  { %v1057_v62 = vpop.f32.mrf.mxu1 }
 0x22b   :  { %v3762_v31 = vadd.f32 %v1057_v62, %v3676_v57  ;;  %v1160_v13 = vpack.c.bf16 %v754_v11, %v753_v16  ;;  %v690_v40 = vpop.f32.mrf.mxu3  ;;  %v769_v16 = vmax.f32 %v663_v61, 0.0 }
 0x22e   :  { %v627_v7 = vpop.f32.mrf.mxu0 }
 0x22f   :  { %v628_v19 = vadd.f32 %v3369_v23, %v627_v7  ;;  %v778_v7 = vmax.f32 %v686_v5, 0.0 }
 0x231   :  { %v755_v29 = vmax.f32 %v628_v19, 0.0 }
 0x232   :  { %v3768_v24 = vpop.f32.mrf.mxu1 }
 0x233   :  { %v692_v62 = vpop.f32.mrf.mxu3 }
 0x235   :  { %2681 = vmatmul.msk.bf16.gmra.mxu2 %vm815_vm3, %v1160_v13  ;;  %v770_v13 = vmax.f32 %v666_v4, 0.0  ;;  %v2741_v4 = vld [vmem:[%s4466_s5 + $0x60] sm:$0xf] }
 0x236   :  { %v630_v15 = vpop.f32.mrf.mxu0 }
 0x237   :  { %v631_v54 = vadd.f32 %v3369_v23, %v630_v15  ;;  %v1074_v15 = vadd.f32 %v3754_v27, %v3666_v17  ;;  %v1315_v19 = vpack.c.bf16 %v770_v13, %v769_v16  ;;  %v693_v17 = vadd.f32 %v3369_v23, %v692_v62 }
 0x239   :  { %v756_v20 = vmax.f32 %v631_v54, 0.0 }
 0x23a   :  { %v1062_v57 = vpop.f32.mrf.mxu1 }
 0x23b   :  { %v3773_v42 = vadd.f32 %v1062_v57, %v3696_v1  ;;  %v1161_v22 = vpack.c.bf16 %v756_v20, %v755_v29  ;;  %v695_v12 = vpop.f32.mrf.mxu3 }
 0x23c   :  { %v696_v45 = vadd.f32 %v3369_v23, %v695_v12 }
 0x23e   :  { %v632_v50 = vpop.f32.mrf.mxu0 }
 0x23f   :  { %v633_v25 = vadd.f32 %v3369_v23, %v632_v50  ;;  %v691_v50 = vadd.f32 %v3369_v23, %v690_v40 }
 0x241   :  { %v757_v34 = vmax.f32 %v633_v25, 0.0  ;;  %v668_v25 = vadd.f32 %v3369_v23, %v3714_v3  ;;  %v780_v29 = vmax.f32 %v691_v50, 0.0 }
 0x242   :  { %v3777_v47 = vpop.f32.mrf.mxu1 }
 0x243   :  { %v1162_v32 = vpack.c.bf16 %v757_v34, %v757_v34  ;;  %v697_v8 = vpop.f32.mrf.mxu3  ;;  %v781_v34 = vmax.f32 %v693_v17, 0.0 }
 0x244   :  { %v698_v2 = vadd.f32 %v3369_v23, %v697_v8 }
 0x245   :  { %2682 = vmatmul.msk.bf16.gmra.mxu2 %vm815_vm3, %v1161_v22  ;;  %2683 = vmatmul.msk.bf16.vlgmr.msrb.gmra.mxu3 %vm815_vm3, %v1162_v32  ;;  %v771_v22 = vmax.f32 %v668_v25, 0.0  ;;  %v3162_v25 = vld [vmem:[%s4466_s5 + $0x34] sm:$0xf] }
 0x248   :  { %v1125_v36 = vpop.f32.mrf.mxu2 }
 0x249   :  { %v3782_v1 = vadd.f32 %v1125_v36, %v3732_v30  ;;  %v1072_v30 = vadd.f32 %v3736_v33, %v3643_v56  ;;  %v688_v56 = vadd.f32 %v3369_v23, %v687_v28  ;;  %v671_v28 = vadd.f32 %v3369_v23, %v3721_v39  ;;  %v3255_v23 = vld [vmem:[%s4462_s2] ss:$0 sm:$0xff] }
 0x24a   :  { %v1067_v41 = vpop.f32.mrf.mxu1  ;;  %v678_v16 = vadd.f32 %v3255_v23, %v3750_v63 }
 0x24b   :  { %v3791_v58 = vadd.f32 %v1067_v41, %v3718_v10  ;;  %v779_v11 = vmax.f32 %v688_v56, 0.0  ;;  %v772_v32 = vmax.f32 %v671_v28, 0.0  ;;  %v700_v55 = vpop.f32.mrf.mxu3  ;;  %v1394_v41 = vpack.c.bf16 %v781_v34, %v780_v29  ;;  %v2785_v28 = vld [vmem:[%s4466_s5 + $0x38] sm:$0xf0] }
 0x24c   :  { %v701_v37 = vadd.f32 %v3255_v23, %v700_v55  ;;  %v775_v13 = vmax.f32 %v678_v16, 0.0  ;;  %v2788_v34 = vor.u32 %v3162_v25, %v2785_v28  ;;  %v3187_v25 = vld [vmem:[%s4466_s5 + $0xf4] sm:$0xf0] }
 0x24d   :  { %v1393_v18 = vpack.c.bf16 %v779_v11, %v778_v7  ;;  %v1316_v40 = vpack.c.bf16 %v772_v32, %v771_v22  ;;  %v3169_v7 = vld [vmem:[%s4466_s5 + $0x64] sm:$0xf0] }
 0x24e   :  { %v2742_v12 = vor.u32 %v3169_v7, %v2741_v4  ;;  %v1318_v50 = vpack.c.bf16 %v775_v13, %v775_v13  ;;  %1640 = vmatpush.bf16.msra.mxu1 %v2788_v34  ;;  %v2727_v13 = vld [vmem:[%s4466_s5 + $0x48] sm:$0xf0] }
 0x250   :  { %v1127_v6 = vpop.f32.mrf.mxu2 }
 0x251   :  { %v3795_v53 = vadd.f32 %v1127_v6, %v1072_v30  ;;  %v3171_v30 = vld [vmem:[%s4466_s5 + $0x74] sm:$0xf0]  ;;  %v782_v6 = vmax.f32 %v696_v45, 0.0 }
 0x252   :  { %v1069_v59 = vpop.f32.mrf.mxu1 }
 0x253   :  { %v702_v3 = vpop.f32.mrf.mxu3  ;;  %v783_v59 = vmax.f32 %v698_v2, 0.0 }
 0x255   :  { %2705 = vmatmul.msk.bf16.vlgmr.msrb.gmra.mxu2 %vm815_vm3, %v1314_v0  ;;  %2718 = vmatmul.msk.bf16.vlgmr.msra.gmra.mxu3 %vm815_vm3, %v1392_v21  ;;  %v773_v0 = vmax.f32 %v673_v51, 0.0  ;;  %v774_v21 = vmax.f32 %v676_v52, 0.0 }
 0x257   :  { %v1317_v56 = vpack.c.bf16 %v774_v21, %v773_v0 }
 0x258   :  { %v1130_v10 = vpop.f32.mrf.mxu2 }
 0x259   :  { %v3801_v43 = vadd.f32 %v1130_v10, %v3748_v46  ;;  %v1395_v10 = vpack.c.bf16 %v783_v59, %v782_v6  ;;  %v2725_v6 = vld [vmem:[%s4466_s5 + $0x40] sm:$0xf] }
 0x25a   :  { %v3804_v33 = vpop.f32.mrf.mxu1 }
 0x260   :  { %v1132_v46 = vpop.f32.mrf.mxu2 }
 0x261   :  { %v3812_v57 = vadd.f32 %v1132_v46, %v1074_v15 }
 0x262   :  { %v3814_v54 = vpop.f32.mrf.mxu1 }
 0x265   :  { %2706 = vmatmul.msk.bf16.gmra.mxu2 %vm815_vm3, %v1315_v19  ;;  %2719 = vmatmul.msk.bf16.gmra.mxu3 %vm815_vm3, %v1393_v18  ;;  %v3170_v18 = vld [vmem:[%s4466_s5 + $0x74] sm:$0xf]  ;;  %v2751_v19 = vld [vmem:[%s4466_s5 + $0x78] sm:$0xf0] }
 0x266   :  { %v2754_v8 = vor.u32 %v3170_v18, %v2751_v19 }
 0x268   :  { %v1135_v35 = vpop.f32.mrf.mxu2  ;;  %1571 = vmatpush.bf16.msra.mxu2 %v2754_v8 }
 0x269   :  { %v3820_v20 = vadd.f32 %v1135_v35, %v3762_v31 }
 0x26a   :  { %v3823_v27 = vpop.f32.mrf.mxu1 }
 0x270   :  { %v3829_v36 = vpop.f32.mrf.mxu2 }
 0x272   :  { %v3831_v31 = vpop.f32.mrf.mxu1 }
 0x275   :  { %2707 = vmatmul.msk.bf16.gmra.mxu2 %vm815_vm3, %v1316_v40  ;;  %2720 = vmatmul.msk.bf16.gmra.mxu3 %vm815_vm3, %v1394_v41  ;;  %v3167_v41 = vld [vmem:[%s4466_s5 + $0x54] sm:$0xf0]  ;;  %v3168_v40 = vld [vmem:[%s4466_s5 + $0x64] sm:$0xf] }
 0x278   :  { %v1140_v44 = vpop.f32.mrf.mxu2 }
 0x279   :  { %v3837_v39 = vadd.f32 %v1140_v44, %v3773_v42  ;;  %v2750_v42 = vor.u32 %v3171_v30, %v2749_v49 }
 0x27a   :  { %v3840_v48 = vpop.f32.mrf.mxu1 }
 0x27b   :  { %1558 = vmatpush.bf16.msrb.mxu3 %v2750_v42  ;;  %v3160_v42 = vld [vmem:[%s4466_s5 + $0x24] sm:$0xf] }
 0x27f   :  { %1559 = vmatpush.bf16.msrb.mxu3 %v2742_v12 }
 0x280   :  { %v3852_v62 = vpop.f32.mrf.mxu2 }
 0x282   :  { %v3854_v5 = vpop.f32.mrf.mxu1 }
 0x285   :  { %2708 = vmatmul.msk.bf16.gmra.mxu2 %vm815_vm3, %v1317_v56  ;;  %2721 = vmatmul.msk.bf16.gmra.mxu3 %vm815_vm3, %v1395_v10  ;;  %v3158_v10 = vld [vmem:[%s4466_s5 + $0x14] sm:$0xf]  ;;  %v2769_v56 = vld [vmem:[%s4466_s5 + $0x18] sm:$0xf0] }
 0x288   :  { %v1145_v26 = vpop.f32.mrf.mxu2 }
 0x289   :  { %v3859_v61 = vadd.f32 %v1145_v26, %v3791_v58  ;;  %v784_v58 = vmax.f32 %v701_v37, 0.0  ;;  %v2772_v26 = vor.u32 %v3158_v10, %v2769_v56  ;;  %v2761_v37 = vld [vmem:[%s4466_s5 + $0x8] sm:$0xf0]  ;;  %v2759_v10 = vld [vmem:[%s4466_s5] sm:$0xf] }
 0x28a   :  { %v3870_v11 = vpop.f32.mrf.mxu1  ;;  %v3157_v56 = vld [vmem:[%s4466_s5 + $0x4] sm:$0xf0] }
 0x28b   :  { %v1396_v46 = vpack.c.bf16 %v784_v58, %v784_v58 }
 0x290   :  { %v1147_v15 = vpop.f32.mrf.mxu2 }
 0x292   :  { %v3879_v35 = vpop.f32.mrf.mxu1 }
 0x295   :  { %2709 = vmatmul.msk.bf16.gmra.mxu2 %vm815_vm3, %v1318_v50  ;;  %2722 = vmatmul.msk.bf16.gmra.mxu3 %vm815_vm3, %v1396_v46  ;;  %v918_v46 = vadd.f32 %v3513_v14, %v3595_v9  ;;  %v2783_v50 = vld [vmem:[%s4466_s5 + $0x30] sm:$0xf] }
 0x297   :  { %v1000_v14 = vadd.f32 %v3704_v60, %v918_v46 }
 0x298   :  { %v1203_v63 = vpop.f32.mrf.mxu2 }
 0x299   :  { %v1227_v17 = vadd.f32 %v1203_v63, %v3782_v1  ;;  %v2733_v1 = vld [vmem:[%s4466_s5 + $0x50] sm:$0xf]  ;;  %v3163_v63 = vld [vmem:[%s4466_s5 + $0x34] sm:$0xf0] }
 0x29a   :  { %v3890_v29 = vpop.f32.mrf.mxu1  ;;  %v2734_v3 = vor.u32 %v3167_v41, %v2733_v1  ;;  %v2784_v9 = vor.u32 %v3163_v63, %v2783_v50  ;;  %v2775_v1 = vld [vmem:[%s4466_s5 + $0x20] sm:$0xf]  ;;  %v3161_v41 = vld [vmem:[%s4466_s5 + $0x24] sm:$0xf0]  ;;  %v3192_v50 = vld [vmem:[%s4466_s5 + $0x124] sm:$0xf] }
 0x29b   :  { %v3893_v22 = vadd.f32 %v3804_v33, %v1227_v17  ;;  %v2743_v33 = vld [vmem:[%s4466_s5 + $0x68] sm:$0xf0]  ;;  %v2817_v17 = vld [vmem:[%s4466_s5 + $0xb0] sm:$0xf] }
 0x29c   :  { %v2746_v45 = vor.u32 %v3168_v40, %v2743_v33  ;;  %1560 = vmatpush.bf16.msrb.mxu3 %v2734_v3  ;;  %v2776_v40 = vor.u32 %v3161_v41, %v2775_v1  ;;  %v2879_v63 = vld [vmem:[%s4466_s5 + $0x128] sm:$0xf0] }
 0x29e   :  { %1572 = vmatpush.bf16.msra.mxu2 %v2746_v45 }
 0x2a0   :  { %v1205_v32 = vpop.f32.mrf.mxu2 }
 0x2a1   :  { %v1228_v55 = vadd.f32 %v1205_v32, %v3795_v53 }
 0x2a2   :  { %v1303_v44 = vpop.f32.mrf.mxu1 }
 0x2a3   :  { %v3909_v53 = vadd.f32 %v3814_v54, %v1228_v55  ;;  %v2777_v54 = vld [vmem:[%s4466_s5 + $0x28] sm:$0xf0]  ;;  %v1078_v55 = vadd.f32 %v3777_v47, %v1000_v14  ;;  %v2843_v47 = vld [vmem:[%s4466_s5 + $0xe0] sm:$0xf]  ;;  %v3185_v44 = vld [vmem:[%s4466_s5 + $0xe4] sm:$0xf0] }
 0x2a4   :  { %v2780_v59 = vor.u32 %v3160_v42, %v2777_v54  ;;  %v2844_v45 = vor.u32 %v3185_v44, %v2843_v47  ;;  %v3159_v42 = vld [vmem:[%s4466_s5 + $0x14] sm:$0xf0]  ;;  %v3178_v14 = vld [vmem:[%s4466_s5 + $0xb4] sm:$0xf] }
 0x2a5   :  { %v1156_v3 = vadd.f32 %v3852_v62, %v1078_v55  ;;  %v2801_v62 = vld [vmem:[%s4466_s5 + $0x90] sm:$0xf] }
 0x2a6   :  { %1641 = vmatpush.bf16.msra.mxu1 %v2780_v59  ;;  %v2835_v59 = vld [vmem:[%s4466_s5 + $0xd0] sm:$0xf] }
 0x2a8   :  { %v1208_v2 = vpop.f32.mrf.mxu2 }
 0x2a9   :  { %v1229_v49 = vadd.f32 %v1208_v2, %v3801_v43  ;;  %v3165_v43 = vld [vmem:[%s4466_s5 + $0x44] sm:$0xf0] }
 0x2aa   :  { %1642 = vmatpush.bf16.msra.mxu1 %v2772_v26  ;;  %v2793_v26 = vld [vmem:[%s4466_s5 + $0x80] sm:$0xf] }
 0x2ab   :  { %v3913_v30 = vadd.f32 %v3823_v27, %v1229_v49  ;;  %v2726_v27 = vor.u32 %v3165_v43, %v2725_v6  ;;  %v3175_v6 = vld [vmem:[%s4466_s5 + $0x94] sm:$0xf0] }
 0x2ac   :  { %v3183_v43 = vld [vmem:[%s4466_s5 + $0xd4] sm:$0xf0] }
 0x2ad   :  { %1561 = vmatpush.bf16.msrb.mxu3 %v2726_v27  ;;  %v2802_v27 = vor.u32 %v3175_v6, %v2801_v62  ;;  %v3182_v6 = vld [vmem:[%s4466_s5 + $0xd4] sm:$0xf] }
 0x2b0   :  { %v1210_v51 = vpop.f32.mrf.mxu2 }
 0x2b1   :  { %v1230_v52 = vadd.f32 %v1210_v51, %v3812_v57  ;;  %1627 = vmatpush.bf16.msra.mxu3 %v2784_v9  ;;  %v2882_v9 = vor.u32 %v3192_v50, %v2879_v63 }
 0x2b3   :  { %v3929_v57 = vadd.f32 %v3831_v31, %v1230_v52  ;;  %v1076_v31 = vadd.f32 %v3768_v24, %v3689_v38  ;;  %v2735_v38 = vld [vmem:[%s4466_s5 + $0x58] sm:$0xf0]  ;;  %v2767_v52 = vld [vmem:[%s4466_s5 + $0x10] sm:$0xf] }
 0x2b4   :  { %v2768_v54 = vor.u32 %v3159_v42, %v2767_v52  ;;  %v3174_v42 = vld [vmem:[%s4466_s5 + $0x94] sm:$0xf] }
 0x2b5   :  { %v1154_v7 = vadd.f32 %v3829_v36, %v1076_v31  ;;  %v3164_v36 = vld [vmem:[%s4466_s5 + $0x44] sm:$0xf]  ;;  %1628 = vmatpush.bf16.msra.mxu3 %v2776_v40  ;;  %v2760_v31 = vor.u32 %v3157_v56, %v2759_v10 }
 0x2b6   :  { %v2730_v15 = vor.u32 %v3164_v36, %v2727_v13  ;;  %v3194_v13 = vld [vmem:[%s4466_s5 + $0x134] sm:$0xf] }
 0x2b8   :  { %v1213_v0 = vpop.f32.mrf.mxu2 }
 0x2b9   :  { %v1231_v21 = vadd.f32 %v1213_v0, %v3820_v20  ;;  %v3156_v20 = vld [vmem:[%s4466_s5 + $0x4] sm:$0xf]  ;;  %v2836_v0 = vor.u32 %v3183_v43, %v2835_v59  ;;  %1629 = vmatpush.bf16.msra.mxu3 %v2768_v54  ;;  %v2803_v54 = vld [vmem:[%s4466_s5 + $0x98] sm:$0xf0] }
 0x2ba   :  { %v2764_v4 = vor.u32 %v3156_v20, %v2761_v37  ;;  %v2827_v20 = vld [vmem:[%s4466_s5 + $0xc0] sm:$0xf]  ;;  %v3181_v37 = vld [vmem:[%s4466_s5 + $0xc4] sm:$0xf0]  ;;  %v2837_v59 = vld [vmem:[%s4466_s5 + $0xd8] sm:$0xf0]  ;;  %v2806_v10 = vor.u32 %v3174_v42, %v2803_v54 }
 0x2bb   :  { %v3939_v23 = vadd.f32 %v3840_v48, %v1231_v21  ;;  %v3166_v48 = vld [vmem:[%s4466_s5 + $0x54] sm:$0xf]  ;;  %v2840_v56 = vor.u32 %v3182_v6, %v2837_v59  ;;  %v2895_v42 = vld [vmem:[%s4466_s5 + $0x140] sm:$0xf]  ;;  %v3197_v54 = vld [vmem:[%s4466_s5 + $0x144] sm:$0xf0] }
 0x2bc   :  { %1643 = vmatpush.bf16.msra.mxu1 %v2764_v4  ;;  %v2738_v24 = vor.u32 %v3166_v48, %v2735_v38  ;;  %v4057_v38 = vld [vmem:[%s4465_s4] ss:$0 sm:$0xff]  ;;  %v3205_v59 = vld [vmem:[%s4466_s5 + $0x184] sm:$0xf0] }
 0x2bd   :  { %1630 = vmatpush.bf16.msra.mxu3 %v2760_v31  ;;  %v2929_v6 = vld [vmem:[%s4466_s5 + $0x180] sm:$0xf] }
 0x2be   :  { %1573 = vmatpush.bf16.msra.mxu2 %v2738_v24 }
 0x2c0   :  { %v1215_v12 = vpop.f32.mrf.mxu2 }
 0x2c1   :  { %v1232_v16 = vadd.f32 %v1215_v12, %v1154_v7  ;;  %v2828_v7 = vor.u32 %v3181_v37, %v2827_v20  ;;  %v2795_v20 = vld [vmem:[%s4466_s5 + $0x88] sm:$0xf0]  ;;  %v3180_v37 = vld [vmem:[%s4466_s5 + $0xc4] sm:$0xf] }
 0x2c2   :  { %1574 = vmatpush.bf16.msra.mxu2 %v2730_v15  ;;  %v2887_v15 = vld [vmem:[%s4466_s5 + $0x138] sm:$0xf0] }
 0x2c3   :  { %v3957_v58 = vadd.f32 %v3854_v5, %v1232_v16 }
 0x2c8   :  { %v1218_v18 = vpop.f32.mrf.mxu2  ;;  %v1223_v19 = vpop.f32.mrf.mxu3 }
 0x2c9   :  { %v1233_v8 = vadd.f32 %v1218_v18, %v3837_v39  ;;  %v1235_v5 = vadd.f32 %v1223_v19, %v3859_v61  ;;  %v3179_v39 = vld [vmem:[%s4466_s5 + $0xb4] sm:$0xf0]  ;;  %v2851_v61 = vld [vmem:[%s4466_s5 + $0xf0] sm:$0xf]  ;;  %v2890_v19 = vor.u32 %v3194_v13, %v2887_v15 }
 0x2ca   :  { %v2818_v28 = vor.u32 %v3179_v39, %v2817_v17  ;;  %v2852_v34 = vor.u32 %v3187_v25, %v2851_v61  ;;  %v2819_v39 = vld [vmem:[%s4466_s5 + $0xb8] sm:$0xf0]  ;;  %v3186_v61 = vld [vmem:[%s4466_s5 + $0xf4] sm:$0xf]  ;;  %v2919_v13 = vld [vmem:[%s4466_s5 + $0x170] sm:$0xf] }
 0x2cb   :  { %v3989_v32 = vadd.f32 %v3870_v11, %v1233_v8  ;;  %v3992_v60 = vadd.f32 %v3890_v29, %v1235_v5  ;;  %v2809_v11 = vld [vmem:[%s4466_s5 + $0xa0] sm:$0xf]  ;;  %v3177_v29 = vld [vmem:[%s4466_s5 + $0xa4] sm:$0xf0]  ;;  %v2853_v25 = vld [vmem:[%s4466_s5 + $0xf8] sm:$0xf0] }
 0x2cc   :  { %1705 = vmatpush.bf16.msrb.mxu2 %v2818_v28  ;;  %1785 = vmatpush.bf16.msrb.mxu1 %v2852_v34  ;;  %v2810_v33 = vor.u32 %v3177_v29, %v2809_v11  ;;  %v3190_v28 = vld [vmem:[%s4466_s5 + $0x114] sm:$0xf]  ;;  %v2871_v34 = vld [vmem:[%s4466_s5 + $0x118] sm:$0xf0]  ;;  %v2822_v11 = vor.u32 %v3178_v14, %v2819_v39  ;;  %v2856_v40 = vor.u32 %v3186_v61, %v2853_v25  ;;  %v3176_v29 = vld [vmem:[%s4466_s5 + $0xa4] sm:$0xf] }
 0x2cd   :  { %v3203_v15 = vld [vmem:[%s4466_s5 + $0x174] sm:$0xf0]  ;;  %v3193_v39 = vld [vmem:[%s4466_s5 + $0x124] sm:$0xf0]  ;;  %v2911_v61 = vld [vmem:[%s4466_s5 + $0x160] sm:$0xf] }
 0x2ce   :  { %v2920_v14 = vor.u32 %v3203_v15, %v2919_v13  ;;  %v3208_v13 = vld [vmem:[%s4466_s5 + $0x1a4] sm:$0xf] }
 0x2d0   :  { %v1220_v2 = vpop.f32.mrf.mxu2  ;;  %v1225_v49 = vpop.f32.mrf.mxu3  ;;  %1706 = vmatpush.bf16.msrb.mxu2 %v2810_v33  ;;  %1786 = vmatpush.bf16.msrb.mxu1 %v2844_v45  ;;  %v3184_v33 = vld [vmem:[%s4466_s5 + $0xe4] sm:$0xf]  ;;  %v2845_v45 = vld [vmem:[%s4466_s5 + $0xe8] sm:$0xf0] }
 0x2d1   :  { %v1234_v51 = vadd.f32 %v1220_v2, %v1156_v3  ;;  %v2811_v3 = vld [vmem:[%s4466_s5 + $0xa8] sm:$0xf0]  ;;  %v2874_v2 = vor.u32 %v3190_v28, %v2871_v34  ;;  %v3188_v49 = vld [vmem:[%s4466_s5 + $0x104] sm:$0xf]  ;;  %v2848_v52 = vor.u32 %v3184_v33, %v2845_v45  ;;  %v3201_v28 = vld [vmem:[%s4466_s5 + $0x164] sm:$0xf0] }
 0x2d2   :  { %v2945_v34 = vld [vmem:[%s4466_s5 + $0x1a0] sm:$0xf] }
 0x2d3   :  { %v4033_v21 = vadd.f32 %v3879_v35, %v1234_v51  ;;  %v3173_v35 = vld [vmem:[%s4466_s5 + $0x84] sm:$0xf0]  ;;  %v2814_v51 = vor.u32 %v3176_v29, %v2811_v3  ;;  %v3207_v3 = vld [vmem:[%s4466_s5 + $0x194] sm:$0xf0] }
 0x2d4   :  { %1707 = vmatpush.bf16.msrb.mxu2 %v2802_v27  ;;  %1787 = vmatpush.bf16.msrb.mxu1 %v2836_v0  ;;  %v2794_v4 = vor.u32 %v3173_v35, %v2793_v26  ;;  %v3172_v26 = vld [vmem:[%s4466_s5 + $0x84] sm:$0xf] }
 0x2d8   :  { %v1359_v12 = vpop.f32.mrf.mxu2  ;;  %v1437_v16 = vpop.f32.mrf.mxu3  ;;  %1708 = vmatpush.bf16.msrb.mxu2 %v2794_v4  ;;  %1788 = vmatpush.bf16.msrb.mxu1 %v2828_v7  ;;  %v2829_v4 = vld [vmem:[%s4466_s5 + $0xc8] sm:$0xf0] }
 0x2d9   :  { %v1383_v48 = vadd.f32 %v1359_v12, %v3893_v22  ;;  %v2798_v12 = vor.u32 %v3172_v26, %v2795_v20  ;;  %v3210_v26 = vld [vmem:[%s4466_s5 + $0x1b4] sm:$0xf] }
 0x2da   :  { %v3218_v20 = vld [vmem:[%s4466_s5 + $0x1f4] sm:$0xf] }
 0x2db   :  { %v1461_v24 = vadd.f32 %v1437_v16, %v1383_v48  ;;  %v2832_v16 = vor.u32 %v3180_v37, %v2829_v4  ;;  %v2989_v37 = vld [vmem:[%s4466_s5 + $0x1f8] sm:$0xf0] }
 0x2dd   :  { %v1474_v36 = vadd.f32 %v4057_v38, %v1461_v24 }
 0x2df   :  { %v1483_v46 = vmax.f32 %v1474_v36, 0.0  ;;  %v3195_v36 = vld [vmem:[%s4466_s5 + $0x134] sm:$0xf0] }
 0x2e0   :  { %v1361_v22 = vpop.f32.mrf.mxu2  ;;  %v1439_v18 = vpop.f32.mrf.mxu3 }
 0x2e1   :  { %v4066_v8 = vpack.c.bf16 %v1483_v46, %v1483_v46  ;;  %v1384_v5 = vadd.f32 %v1361_v22, %v3909_v53  ;;  %v2953_v46 = vld [vmem:[%s4466_s5 + $0x1b0] sm:$0xf]  ;;  %v3211_v22 = vld [vmem:[%s4466_s5 + $0x1b4] sm:$0xf0] }
 0x2e3   :  { %v1462_v17 = vadd.f32 %v1439_v18, %v1384_v5  ;;  %2790 = vmatmul.msk.bf16.vlgmr.msra.gmra.mxu1 %vm1550_vm4, %v4066_v8 }
 0x2e4   :  { %1878 = vmatpush.bf16.msra.mxu1 %v2890_v19 }
 0x2e5   :  { %v1475_v53 = vadd.f32 %v4057_v38, %v1462_v17 }
 0x2e7   :  { %v1484_v55 = vmax.f32 %v1475_v53, 0.0  ;;  %v2877_v53 = vld [vmem:[%s4466_s5 + $0x120] sm:$0xf] }
 0x2e8   :  { %v1364_v1 = vpop.f32.mrf.mxu2  ;;  %v1442_v41 = vpop.f32.mrf.mxu3  ;;  %1879 = vmatpush.bf16.msra.mxu1 %v2882_v9  ;;  %v2954_v9 = vor.u32 %v3211_v22, %v2953_v46  ;;  %v2947_v46 = vld [vmem:[%s4466_s5 + $0x1a8] sm:$0xf0]  ;;  %v3216_v22 = vld [vmem:[%s4466_s5 + $0x1e4] sm:$0xf] }
 0x2e9   :  { %v1501_v47 = vpack.c.bf16 %v1484_v55, %v1484_v55  ;;  %v1385_v44 = vadd.f32 %v1364_v1, %v3913_v30  ;;  %v2863_v30 = vld [vmem:[%s4466_s5 + $0x108] sm:$0xf0]  ;;  %v3209_v55 = vld [vmem:[%s4466_s5 + $0x1a4] sm:$0xf0]  ;;  %v2912_v1 = vor.u32 %v3201_v28, %v2911_v61  ;;  %v2973_v61 = vld [vmem:[%s4466_s5 + $0x1d8] sm:$0xf0] }
 0x2ea   :  { %v2866_v43 = vor.u32 %v3188_v49, %v2863_v30 }
 0x2eb   :  { %2755 = vmatmul.msk.bf16.vlgmr.msrb.gmra.mxu3 %vm1550_vm4, %v1501_v47  ;;  %2756 = vmatmul.msk.bf16.vlgmr.msra.gmra.mxu2 %vm1550_vm4, %v1501_v47  ;;  %v1463_v62 = vadd.f32 %v1442_v41, %v1385_v44  ;;  %v2946_v41 = vor.u32 %v3209_v55, %v2945_v34  ;;  %v3199_v47 = vld [vmem:[%s4466_s5 + $0x154] sm:$0xf0]  ;;  %v2937_v44 = vld [vmem:[%s4466_s5 + $0x190] sm:$0xf] }
 0x2ec   :  { %1718 = vmatpush.bf16.msrb.mxu3 %v2822_v11  ;;  %1798 = vmatpush.bf16.msra.mxu2 %v2856_v40  ;;  %v2869_v11 = vld [vmem:[%s4466_s5 + $0x110] sm:$0xf]  ;;  %v2938_v30 = vor.u32 %v3207_v3, %v2937_v44  ;;  %v2965_v44 = vld [vmem:[%s4466_s5 + $0x1c8] sm:$0xf0] }
 0x2ed   :  { %1880 = vmatpush.bf16.msra.mxu1 %v2874_v2  ;;  %v1476_v31 = vadd.f32 %v4057_v38, %v1463_v62  ;;  %v2903_v40 = vld [vmem:[%s4466_s5 + $0x150] sm:$0xf] }
 0x2ee   :  { %v2904_v49 = vor.u32 %v3199_v47, %v2903_v40  ;;  %v3204_v40 = vld [vmem:[%s4466_s5 + $0x184] sm:$0xf] }
 0x2ef   :  { %v1485_v48 = vmax.f32 %v1476_v31, 0.0  ;;  %v2955_v31 = vld [vmem:[%s4466_s5 + $0x1b8] sm:$0xf0]  ;;  %v3212_v47 = vld [vmem:[%s4466_s5 + $0x1c4] sm:$0xf] }
 0x2f0   :  { %v1366_v27 = vpop.f32.mrf.mxu2  ;;  %v1444_v0 = vpop.f32.mrf.mxu3  ;;  %1719 = vmatpush.bf16.msrb.mxu3 %v2814_v51  ;;  %1799 = vmatpush.bf16.msra.mxu2 %v2848_v52  ;;  %v2861_v51 = vld [vmem:[%s4466_s5 + $0x100] sm:$0xf]  ;;  %v3189_v52 = vld [vmem:[%s4466_s5 + $0x104] sm:$0xf0] }
 0x2f1   :  { %v1386_v35 = vadd.f32 %v1366_v27, %v3929_v57  ;;  %1881 = vmatpush.bf16.msra.mxu1 %v2866_v43  ;;  %v2885_v57 = vld [vmem:[%s4466_s5 + $0x130] sm:$0xf]  ;;  %v4162_v63 = vpack.c.bf16 %v1485_v48, %v1485_v48  ;;  %v2862_v43 = vor.u32 %v3189_v52, %v2861_v51  ;;  %v3202_v27 = vld [vmem:[%s4466_s5 + $0x174] sm:$0xf]  ;;  %v2992_v48 = vor.u32 %v3218_v20, %v2989_v37  ;;  %v3219_v52 = vld [vmem:[%s4466_s5 + $0x1f4] sm:$0xf0] }
 0x2f2   :  { %v2886_v50 = vor.u32 %v3195_v36, %v2885_v57  ;;  %v2958_v57 = vor.u32 %v3210_v26, %v2955_v31  ;;  %v2913_v36 = vld [vmem:[%s4466_s5 + $0x168] sm:$0xf0]  ;;  %v2987_v51 = vld [vmem:[%s4466_s5 + $0x1f0] sm:$0xf]  ;;  %v3217_v26 = vld [vmem:[%s4466_s5 + $0x1e4] sm:$0xf0] }
 0x2f3   :  { %v1464_v7 = vadd.f32 %v1444_v0, %v1386_v35  ;;  %v2896_v0 = vor.u32 %v3197_v54, %v2895_v42  ;;  %v3227_v54 = vld [vmem:[%s4466_s5 + $0x234] sm:$0xf0] }
 0x2f4   :  { %1720 = vmatpush.bf16.msrb.mxu3 %v2806_v10  ;;  %1800 = vmatpush.bf16.msra.mxu2 %v2840_v56  ;;  %v2930_v10 = vor.u32 %v3205_v59, %v2929_v6  ;;  %v2921_v56 = vld [vmem:[%s4466_s5 + $0x178] sm:$0xf0] }
 0x2f5   :  { %v1477_v24 = vadd.f32 %v4057_v38, %v1464_v7 }
 0x2f7   :  { %v1486_v18 = vmax.f32 %v1477_v24, 0.0  ;;  %v3200_v24 = vld [vmem:[%s4466_s5 + $0x164] sm:$0xf] }
 0x2f8   :  { %v1369_v19 = vpop.f32.mrf.mxu2  ;;  %v1447_v5 = vpop.f32.mrf.mxu3  ;;  %1721 = vmatpush.bf16.msrb.mxu3 %v2798_v12  ;;  %1801 = vmatpush.bf16.msra.mxu2 %v2832_v16  ;;  %v2924_v12 = vor.u32 %v3202_v27, %v2921_v56  ;;  %v2979_v56 = vld [vmem:[%s4466_s5 + $0x1e0] sm:$0xf] }
 0x2f9   :  { %v4164_v17 = vpack.c.bf16 %v1486_v18, %v1486_v18  ;;  %v1387_v25 = vadd.f32 %v1369_v19, %v3939_v23  ;;  %v2878_v23 = vor.u32 %v3193_v39, %v2877_v53  ;;  %v2981_v18 = vld [vmem:[%s4466_s5 + $0x1e8] sm:$0xf0]  ;;  %v3198_v19 = vld [vmem:[%s4466_s5 + $0x154] sm:$0xf]  ;;  %v2980_v37 = vor.u32 %v3217_v26, %v2979_v56 }
 0x2fa   :  { %v3214_v39 = vld [vmem:[%s4466_s5 + $0x1d4] sm:$0xf] }
 0x2fb   :  { %2789 = vmatmul.msk.bf16.vlgmr.msra.gmra.mxu3 %vm1550_vm4, %v4066_v8  ;;  %2823 = vmatmul.msk.bf16.vlgmr.msrb.gmra.mxu2 %vm1550_vm4, %v4162_v63  ;;  %v3191_v8 = vld [vmem:[%s4466_s5 + $0x114] sm:$0xf0]  ;;  %v1465_v29 = vadd.f32 %v1447_v5, %v1387_v25  ;;  %v3242_v56 = vld [vmem:[%s4468_s7 + $0x70] sm:$0xff] }
 0x2fc   :  { %2857 = vmatmul.msk.bf16.vlgmr.msrb.gmra.mxu1 %vm1550_vm4, %v4164_v17  ;;  %1865 = vmatpush.bf16.msra.mxu3 %v2886_v50  ;;  %v2870_v2 = vor.u32 %v3191_v8, %v2869_v11  ;;  %v2950_v50 = vor.u32 %v3208_v13, %v2947_v46  ;;  %v3196_v11 = vld [vmem:[%s4466_s5 + $0x144] sm:$0xf]  ;;  %v2897_v8 = vld [vmem:[%s4466_s5 + $0x148] sm:$0xf0]  ;;  %v2997_v46 = vld [vmem:[%s4466_s5 + $0x200] sm:$0xf] }
 0x2fd   :  { %1945 = vmatpush.bf16.msrb.mxu2 %v2920_v14  ;;  %2025 = vmatpush.bf16.msrb.mxu1 %v2954_v9  ;;  %v1478_v62 = vadd.f32 %v4057_v38, %v1465_v29  ;;  %v2984_v14 = vor.u32 %v3216_v22, %v2981_v18  ;;  %v2939_v9 = vld [vmem:[%s4466_s5 + $0x198] sm:$0xf0]  ;;  %v3221_v22 = vld [vmem:[%s4466_s5 + $0x204] sm:$0xf0] }
 0x2ff   :  { %v1487_v35 = vmax.f32 %v1478_v62, 0.0  ;;  %v3021_v62 = vld [vmem:[%s4466_s5 + $0x230] sm:$0xf] }
 0x300   :  { %v1371_v33 = vpop.f32.mrf.mxu2  ;;  %v1449_v45 = vpop.f32.mrf.mxu3  ;;  %1866 = vmatpush.bf16.msra.mxu3 %v2878_v23 }
 0x301   :  { %1946 = vmatpush.bf16.msrb.mxu2 %v2912_v1  ;;  %2026 = vmatpush.bf16.msrb.mxu1 %v2946_v41  ;;  %v1388_v16 = vadd.f32 %v1371_v33, %v3957_v58  ;;  %v4256_v15 = vpack.c.bf16 %v1487_v35, %v1487_v35  ;;  %v2976_v41 = vor.u32 %v3214_v39, %v2973_v61  ;;  %v3013_v35 = vld [vmem:[%s4466_s5 + $0x220] sm:$0xf]  ;;  %v3222_v39 = vld [vmem:[%s4466_s5 + $0x214] sm:$0xf]  ;;  %v3007_v61 = vld [vmem:[%s4466_s5 + $0x218] sm:$0xf0] }
 0x302   :  { %v2900_v33 = vor.u32 %v3196_v11, %v2897_v8 }
 0x303   :  { %v1466_v5 = vadd.f32 %v1449_v45, %v1388_v16  ;;  %v3215_v16 = vld [vmem:[%s4466_s5 + $0x1d4] sm:$0xf0] }
 0x304   :  { %1867 = vmatpush.bf16.msra.mxu3 %v2870_v2 }
 0x305   :  { %1947 = vmatpush.bf16.msrb.mxu2 %v2904_v49  ;;  %2027 = vmatpush.bf16.msrb.mxu1 %v2938_v30  ;;  %v1479_v23 = vadd.f32 %v4057_v38, %v1466_v5  ;;  %v2968_v30 = vor.u32 %v3212_v47, %v2965_v44  ;;  %v3023_v5 = vld [vmem:[%s4466_s5 + $0x238] sm:$0xf0] }
 0x307   :  { %v1488_v45 = vmax.f32 %v1479_v23, 0.0 }
 0x308   :  { %v1374_v4 = vpop.f32.mrf.mxu2  ;;  %v1452_v7 = vpop.f32.mrf.mxu3  ;;  %1868 = vmatpush.bf16.msra.mxu3 %v2862_v43  ;;  %v2988_v43 = vor.u32 %v3219_v52, %v2987_v51  ;;  %v3235_v51 = vld [vmem:[%s4468_s7 + $0x38] sm:$0xff]  ;;  %v3234_v52 = vld [vmem:[%s4468_s7 + $0x30] sm:$0xff] }
 0x309   :  { %1948 = vmatpush.bf16.msrb.mxu2 %v2896_v0  ;;  %2028 = vmatpush.bf16.msrb.mxu1 %v2930_v10  ;;  %v1389_v58 = vadd.f32 %v1374_v4, %v3989_v32  ;;  %v2916_v32 = vor.u32 %v3200_v24, %v2913_v36  ;;  %v1889_v27 = vpack.c.bf16 %v1488_v45, %v1488_v45 }
 0x30a   :  { %v3022_v10 = vor.u32 %v3227_v54, %v3021_v62 }
 0x30b   :  { %2824 = vmatmul.msk.bf16.vlgmr.msrb.gmra.mxu3 %vm1550_vm4, %v4162_v63  ;;  %2858 = vmatmul.msk.bf16.vlgmr.msra.gmra.mxu2 %vm1550_vm4, %v4164_v17  ;;  %v2905_v63 = vld [vmem:[%s4466_s5 + $0x158] sm:$0xf0]  ;;  %v3206_v17 = vld [vmem:[%s4466_s5 + $0x194] sm:$0xf]  ;;  %v1467_v53 = vadd.f32 %v1452_v7, %v1389_v58  ;;  %v3213_v58 = vld [vmem:[%s4466_s5 + $0x1c4] sm:$0xf0] }
 0x30c   :  { %2892 = vmatmul.msk.bf16.vlgmr.msra.gmra.mxu1 %vm1550_vm4, %v4256_v15  ;;  %1958 = vmatpush.bf16.msrb.mxu3 %v2924_v12  ;;  %v2908_v34 = vor.u32 %v3198_v19, %v2905_v63  ;;  %v2942_v55 = vor.u32 %v3206_v17, %v2939_v9  ;;  %v2971_v12 = vld [vmem:[%s4466_s5 + $0x1d0] sm:$0xf]  ;;  %v3226_v19 = vld [vmem:[%s4466_s5 + $0x234] sm:$0xf]  ;;  %v3224_v63 = vld [vmem:[%s4466_s5 + $0x224] sm:$0xf] }
 0x30d   :  { %2038 = vmatpush.bf16.msra.mxu2 %v2958_v57  ;;  %2118 = vmatpush.bf16.msra.mxu1 %v2992_v48  ;;  %v1480_v29 = vadd.f32 %v4057_v38, %v1467_v53  ;;  %v3005_v57 = vld [vmem:[%s4466_s5 + $0x210] sm:$0xf]  ;;  %v3223_v48 = vld [vmem:[%s4466_s5 + $0x214] sm:$0xf0]  ;;  %v3015_v17 = vld [vmem:[%s4466_s5 + $0x228] sm:$0xf0] }
 0x30e   :  { %v3006_v13 = vor.u32 %v3223_v48, %v3005_v57  ;;  %v3018_v53 = vor.u32 %v3224_v63, %v3015_v17  ;;  %v3239_v48 = vld [vmem:[%s4468_s7 + $0x58] sm:$0xff]  ;;  %v2209_v17 = vld [vmem:[%s4469_s6] sm:$0x3] }
 0x30f   :  { %v1489_v42 = vmax.f32 %v1480_v29, 0.0 }
 0x310   :  { %v1376_v25 = vpop.f32.mrf.mxu2  ;;  %v1454_v28 = vpop.f32.mrf.mxu3  ;;  %1959 = vmatpush.bf16.msrb.mxu3 %v2916_v32  ;;  %v2998_v32 = vor.u32 %v3221_v22, %v2997_v46  ;;  %v3237_v46 = vld [vmem:[%s4468_s7 + $0x48] sm:$0xff] }
 0x311   :  { %v1390_v1 = vadd.f32 %v1376_v25, %v4033_v21  ;;  %2039 = vmatpush.bf16.msra.mxu2 %v2950_v50  ;;  %2119 = vmatpush.bf16.msra.mxu1 %v2984_v14  ;;  %v2931_v21 = vld [vmem:[%s4466_s5 + $0x188] sm:$0xf0]  ;;  %v1969_v31 = vpack.c.bf16 %v1489_v42, %v1489_v42  ;;  %v3026_v14 = vor.u32 %v3226_v19, %v3023_v5 }
 0x312   :  { %v2934_v49 = vor.u32 %v3204_v40, %v2931_v21  ;;  %v3010_v25 = vor.u32 %v3222_v39, %v3007_v61 }
 0x313   :  { %v1468_v3 = vadd.f32 %v1454_v28, %v1390_v1  ;;  %v3220_v28 = vld [vmem:[%s4466_s5 + $0x204] sm:$0xf] }
 0x314   :  { %1960 = vmatpush.bf16.msrb.mxu3 %v2908_v34  ;;  %v2999_v34 = vld [vmem:[%s4466_s5 + $0x208] sm:$0xf0] }
 0x315   :  { %v1481_v2 = vadd.f32 %v4057_v38, %v1468_v3  ;;  %2040 = vmatpush.bf16.msra.mxu2 %v2942_v55  ;;  %2120 = vmatpush.bf16.msra.mxu1 %v2976_v41  ;;  %v3002_v55 = vor.u32 %v3220_v28, %v2999_v34  ;;  %v2211_v28 = vperm.slane %v2209_v17, 0 }
 0x317   :  { %v1490_v50 = vmax.f32 %v1481_v2, 0.0 }
 0x318   :  { %v1379_v6 = vpop.f32.mrf.mxu2  ;;  %v1457_v59 = vpop.f32.mrf.mxu3  ;;  %1961 = vmatpush.bf16.msrb.mxu3 %v2900_v33 }
 0x319   :  { %v1391_v0 = vadd.f32 %v1379_v6, %v3992_v60  ;;  %2041 = vmatpush.bf16.msra.mxu2 %v2934_v49  ;;  %2121 = vmatpush.bf16.msra.mxu1 %v2968_v30  ;;  %v3225_v60 = vld [vmem:[%s4466_s5 + $0x224] sm:$0xf0]  ;;  %v2049_v9 = vpack.c.bf16 %v1490_v50, %v1490_v50 }
 0x31a   :  { %v3014_v7 = vor.u32 %v3225_v60, %v3013_v35  ;;  %v3233_v6 = vld [vmem:[%s4468_s7 + $0x28] sm:$0xff] }
 0x31b   :  { %v1469_v20 = vadd.f32 %v1457_v59, %v1391_v0  ;;  %2891 = vmatmul.msk.bf16.vlgmr.msra.gmra.mxu3 %vm1550_vm4, %v4256_v15  ;;  %2925 = vmatmul.msk.bf16.vlgmr.msrb.gmra.mxu2 %vm1550_vm4, %v1889_v27  ;;  %v2963_v15 = vld [vmem:[%s4466_s5 + $0x1c0] sm:$0xf]  ;;  %v3243_v0 = vld [vmem:[%s4468_s7 + $0x78] sm:$0xff] }
 0x31c   :  { %2959 = vmatmul.msk.bf16.vlgmr.msrb.gmra.mxu1 %vm1550_vm4, %v1969_v31  ;;  %2105 = vmatpush.bf16.msra.mxu3 %v2988_v43  ;;  %v2964_v18 = vor.u32 %v3213_v58, %v2963_v15  ;;  %v3232_v59 = vld [vmem:[%s4468_s7 + $0x20] sm:$0xff] }
 0x31d   :  { %v1482_v4 = vadd.f32 %v4057_v38, %v1469_v20  ;;  %2185 = vmatpush.bf16.msrb.mxu2 %v3022_v10  ;;  %v2972_v38 = vor.u32 %v3215_v16, %v2971_v12  ;;  %2353 = vmatpush.bf16.msrb.mxu1 %v3235_v51  ;;  %v3231_v10 = vld [vmem:[%s4468_s7 + $0x18] sm:$0xff]  ;;  %v3241_v20 = vld [vmem:[%s4468_s7 + $0x68] sm:$0xff]  ;;  %v3228_v12 = vld [vmem:[%s4468_s7] sm:$0xff] }
 0x31f   :  { %v1491_v23 = vmax.f32 %v1482_v4, 0.0  ;;  %v3229_v4 = vld [vmem:[%s4468_s7 + $0x8] sm:$0xff] }
 0x320   :  { %v1381_v24 = vpop.f32.mrf.mxu2  ;;  %2106 = vmatpush.bf16.msra.mxu3 %v2980_v37  ;;  %v1459_v36 = vpop.f32.mrf.mxu3 }
 0x321   :  { %2186 = vmatpush.bf16.msrb.mxu2 %v3014_v7  ;;  %v2129_v1 = vpack.c.bf16 %v1491_v23, %v1491_v23  ;;  %2354 = vmatpush.bf16.msrb.mxu1 %v3234_v52  ;;  %v3240_v7 = vld [vmem:[%s4468_s7 + $0x60] sm:$0xff] }
 0x324   :  { %2107 = vmatpush.bf16.msra.mxu3 %v2972_v38  ;;  %v3238_v38 = vld [vmem:[%s4468_s7 + $0x50] sm:$0xff] }
 0x325   :  { %2187 = vmatpush.bf16.msrb.mxu2 %v3006_v13  ;;  %2355 = vmatpush.bf16.msrb.mxu1 %v3233_v6 }
 0x328   :  { %2108 = vmatpush.bf16.msra.mxu3 %v2964_v18 }
 0x329   :  { %2188 = vmatpush.bf16.msrb.mxu2 %v2998_v32  ;;  %2356 = vmatpush.bf16.msrb.mxu1 %v3232_v59  ;;  %v3236_v32 = vld [vmem:[%s4468_s7 + $0x40] sm:$0xff] }
 0x32b   :  { %2926 = vmatmul.msk.bf16.vlgmr.msrb.gmra.mxu3 %vm1550_vm4, %v1889_v27  ;;  %2960 = vmatmul.msk.bf16.vlgmr.msra.gmra.mxu2 %vm1550_vm4, %v1969_v31  ;;  %v3230_v31 = vld [vmem:[%s4468_s7 + $0x10] sm:$0xff] }
 0x32c   :  { %2994 = vmatmul.msk.bf16.vlgmr.msra.gmra.mxu1 %vm1550_vm4, %v2049_v9  ;;  %2198 = vmatpush.bf16.msrb.mxu3 %v3026_v14 }
 0x32d   :  { %2366 = vmatpush.bf16.msra.mxu2 %v3243_v0  ;;  %2357 = vmatpush.bf16.msrb.mxu1 %v3231_v10 }
 0x330   :  { %2199 = vmatpush.bf16.msrb.mxu3 %v3018_v53 }
 0x331   :  { %2367 = vmatpush.bf16.msra.mxu2 %v3242_v56  ;;  %2358 = vmatpush.bf16.msrb.mxu1 %v3230_v31 }
 0x334   :  { %2200 = vmatpush.bf16.msrb.mxu3 %v3010_v25 }
 0x335   :  { %2368 = vmatpush.bf16.msra.mxu2 %v3241_v20  ;;  %2359 = vmatpush.bf16.msrb.mxu1 %v3229_v4 }
 0x338   :  { %2201 = vmatpush.bf16.msrb.mxu3 %v3002_v55 }
 0x339   :  { %2369 = vmatpush.bf16.msra.mxu2 %v3240_v7  ;;  %2360 = vmatpush.bf16.msrb.mxu1 %v3228_v12 }
 0x33b   :  { %2993 = vmatmul.msk.bf16.vlgmr.msra.gmra.mxu3 %vm1550_vm4, %v2049_v9  ;;  %3027 = vmatmul.msk.bf16.vlgmr.msrb.gmra.mxu2 %vm1550_vm4, %v2129_v1 }
 0x33d   :  { %2370 = vmatpush.bf16.msra.mxu2 %v3239_v48 }
 0x341   :  { %2371 = vmatpush.bf16.msra.mxu2 %v3238_v38 }
 0x345   :  { %2372 = vmatpush.bf16.msra.mxu2 %v3237_v46 }
 0x349   :  { %2373 = vmatpush.bf16.msra.mxu2 %v3236_v32 }
 0x34b   :  { %3028 = vmatmul.msk.bf16.vlgmr.msrb.gmra.mxu3 %vm1550_vm4, %v2129_v1 }
 0x360   :  { %v1645_v41 = vpop.f32.mrf.mxu1 }
 0x368   :  { %v1647_v11 = vpop.f32.mrf.mxu1 }
 0x36e   :  { %v1563_v8 = vpop.f32.mrf.mxu3  ;;  %v1576_v40 = vpop.f32.mrf.mxu2 }
 0x36f   :  { %v4398_v29 = vadd.f32 %v1645_v41, %v1576_v40 }
 0x376   :  { %v1565_v21 = vpop.f32.mrf.mxu3  ;;  %v1578_v47 = vpop.f32.mrf.mxu2 }
 0x377   :  { %v2212_v47 = vperm.slane %v2209_v17, 1 }
 0x379   :  { %v1790_v44 = vpop.f32.mrf.mxu1 }
 0x37e   :  { %v1632_v3 = vpop.f32.mrf.mxu3  ;;  %v1710_v33 = vpop.f32.mrf.mxu2 }
 0x37f   :  { %v1633_v36 = vadd.f32 %v1632_v3, %v1563_v8 }
 0x381   :  { %v1792_v45 = vpop.f32.mrf.mxu1  ;;  %v1727_v58 = vadd.f32 %v1710_v33, %v1633_v36 }
 0x383   :  { %v1807_v18 = vadd.f32 %v1790_v44, %v1727_v58 }
 0x386   :  { %v1634_v2 = vpop.f32.mrf.mxu3  ;;  %v1712_v49 = vpop.f32.mrf.mxu2 }
 0x389   :  { %v4400_v30 = vpop.f32.mrf.mxu1 }
 0x38e   :  { %v1723_v42 = vpop.f32.mrf.mxu3  ;;  %v1803_v62 = vpop.f32.mrf.mxu2 }
 0x38f   :  { %v1728_v63 = vadd.f32 %v1723_v42, %v4398_v29 }
 0x391   :  { %v1885_v54 = vpop.f32.mrf.mxu1  ;;  %v1808_v61 = vadd.f32 %v1803_v62, %v1728_v63 }
 0x393   :  { %v1888_v55 = vadd.f32 %v4400_v30, %v1808_v61  ;;  %v3254_v30 = vld [vmem:[%s4467_s8] ss:$0 sm:$0xff] }
 0x396   :  { %v1725_v43 = vpop.f32.mrf.mxu3  ;;  %v1805_v27 = vpop.f32.mrf.mxu2 }
 0x399   :  { %v2030_v26 = vpop.f32.mrf.mxu1 }
 0x39e   :  { %v1870_v35 = vpop.f32.mrf.mxu3  ;;  %v1950_v60 = vpop.f32.mrf.mxu2 }
 0x39f   :  { %v1887_v19 = vadd.f32 %v1870_v35, %v1807_v18 }
 0x3a1   :  { %v2032_v37 = vpop.f32.mrf.mxu1  ;;  %v1967_v14 = vadd.f32 %v1950_v60, %v1887_v19 }
 0x3a3   :  { %v2047_v9 = vadd.f32 %v2030_v26, %v1967_v14 }
 0x3a6   :  { %v1872_v16 = vpop.f32.mrf.mxu3  ;;  %v1952_v57 = vpop.f32.mrf.mxu2 }
 0x3a9   :  { %v2123_v24 = vpop.f32.mrf.mxu1 }
 0x3ae   :  { %v1963_v13 = vpop.f32.mrf.mxu3  ;;  %v2043_v15 = vpop.f32.mrf.mxu2 }
 0x3af   :  { %v1968_v1 = vadd.f32 %v1963_v13, %v1888_v55 }
 0x3b1   :  { %v2125_v22 = vpop.f32.mrf.mxu1  ;;  %v2048_v29 = vadd.f32 %v2043_v15, %v1968_v1 }
 0x3b3   :  { %v2128_v21 = vadd.f32 %v2123_v24, %v2048_v29 }
 0x3b6   :  { %v1965_v5 = vpop.f32.mrf.mxu3  ;;  %v2045_v50 = vpop.f32.mrf.mxu2 }
 0x3be   :  { %v2110_v53 = vpop.f32.mrf.mxu3  ;;  %v2190_v39 = vpop.f32.mrf.mxu2 }
 0x3bf   :  { %v2127_v25 = vadd.f32 %v2110_v53, %v2047_v9 }
 0x3c1   :  { %v2207_v34 = vadd.f32 %v2190_v39, %v2127_v25 }
 0x3c3   :  { %v2215_v23 = vadd.f32 %v2211_v28, %v2207_v34 }
 0x3c5   :  { %v2217_v41 = vmax.f32 %v2215_v23, 0.0 }
 0x3c6   :  { %v2112_v11 = vpop.f32.mrf.mxu3  ;;  %v2192_v8 = vpop.f32.mrf.mxu2 }
 0x3c7   :  { %v2219_v40 = vpack.c.bf16 %v2217_v41, %v2217_v41 }
 0x3c9   :  { %2361 = vmatmul.bf16.vlgmr.msrb.gmra.mxu1 %v2219_v40 }
 0x3ce   :  { %v2203_v44 = vpop.f32.mrf.mxu3 }
 0x3cf   :  { %v2208_v3 = vadd.f32 %v2203_v44, %v2128_v21 }
 0x3d1   :  { %v2216_v33 = vadd.f32 %v2212_v47, %v2208_v3 }
 0x3d3   :  { %v2218_v45 = vmax.f32 %v2216_v33, 0.0 }
 0x3d5   :  { %v2220_v2 = vpack.c.bf16 %v2218_v45, %v2218_v45 }
 0x3d6   :  { %v2205_v49 = vpop.f32.mrf.mxu3 }
 0x3d7   :  { %2374 = vmatmul.bf16.vlgmr.msra.gmra.mxu2 %v2220_v2 }
 0x446   :  { %v2362_v51 = vpop.f32.mrf.mxu1 }
 0x447   :  { %v2363_v42 = vadd.f32 %v3254_v30, %v2362_v51 }
 0x44e   :  { %v2364_v52 = vpop.f32.mrf.mxu1 }
 0x45a   :  { %v2375_v62 = vpop.f32.mrf.mxu2 }
 0x45b   :  { %v2376_v54 = vadd.f32 %v2375_v62, %v2363_v42 }
 0x45d   :  { %2380 = vst.msk [vmem:[%s4470_s9] sm:$0xff] %vm2379_vm5, %v2376_v54 }
 0x462   :  { %v2377_v6 = vpop.f32.mrf.mxu2 }

</bundles_post_ra>
